<compile_context>
chip_gen: v7x
topology: tpu7x:2x2x1
jax: 0.10.0
libtpu: 0.0.40
codegen_flags: <defaults>
</compile_context>

<pallas_src>
import functools

import jax
import jax.numpy as jnp
import numpy as np
from jax.experimental import pallas as pl
from jax.experimental.pallas import tpu as pltpu

EPS = 1e-5
_ABS_LANE_CAP = 32768        # hard upper bound on lanes per grid step


def _round8(n):
    return ((n + 7) // 8) * 8


# ----------------------------- in-kernel helpers -----------------------------

def _mm(w, h, mxu_bf16):
    """Channel-contraction matmul on the MXU with f32 accumulation.
    Hot path feeds bf16 operands (weights pre-cast in the wrapper); the f32
    path (strict validation, or v5e where the bf16 cast is pure extra VPU
    work) keeps HIGHEST precision — it is not the hot path, and the formerly
    dominant HIGHEST norm-statistics matmuls are gone (roll tree below)."""
    if mxu_bf16:
        return jnp.dot(w, h.astype(jnp.bfloat16),
                       preferred_element_type=jnp.float32)
    return jnp.dot(w, h, preferred_element_type=jnp.float32,
                   precision=jax.lax.Precision.HIGHEST)


def _seg_sum_pow2(x, pos, L):
    """All-reduce sum inside every aligned length-L lane segment (L = 2^m).
    log2(L) butterfly steps of 2x pltpu.roll (XLU slot) + select/add (VPU).
    Every lane of a segment ends up holding the full segment sum, so the
    broadcast back over lanes is free.  O(TOT log L), independent of TB."""
    tot = x.shape[-1]
    s = x
    k = 1
    while k < L:
        right = pltpu.roll(s, shift=tot - k, axis=1)    # lane i <- s[i + k]
        left = pltpu.roll(s, shift=k, axis=1)           # lane i <- s[i - k]
        s = s + jnp.where((pos & k) == 0, right, left)
        k *= 2
    return s


def _seg_sum_onehot(x, L, n_seg):
    """Fallback for non-power-of-two L: one-hot segment matrix generated
    in-kernel from iota (never DMA'd).  Not used on the hot / tested path."""
    tot = x.shape[-1]
    col = jax.lax.broadcasted_iota(jnp.int32, (tot, n_seg), 1)
    seg = jax.lax.broadcasted_iota(jnp.int32, (tot, n_seg), 0) // L
    S = (seg == col).astype(jnp.float32)
    sums = jnp.dot(x, S, preferred_element_type=jnp.float32)
    return jnp.dot(sums, S.T, preferred_element_type=jnp.float32)


def _seg_sum(x, pos, L, n_seg):
    if L & (L - 1) == 0:
        return _seg_sum_pow2(x, pos, L)
    return _seg_sum_onehot(x, L, n_seg)


def _inorm_planes(planes, pos, L, n_seg):
    """Joint InstanceNorm1d (affine=False, biased variance) over the union of
    the given equally-shaped (C, TOT) planes, statistics per aligned length-L
    lane segment (per sample).  The stride=2 block passes [even, odd] so the
    interleaved length-2L signal is normalized without any concatenation."""
    count = float(L * len(planes))
    mean = sum(_seg_sum(p, pos, L, n_seg) for p in planes) * (1.0 / count)
    ds = [p - mean for p in planes]
    var = sum(_seg_sum(d * d, pos, L, n_seg) for d in ds) * (1.0 / count)
    inv = jax.lax.rsqrt(var + EPS)
    return [d * inv for d in ds]


def _shift_next(a, keep):
    # out[:, i] = a[:, i + 1] inside each length-L segment, 0 at segment end.
    return pltpu.roll(a, shift=a.shape[-1] - 1, axis=1) * keep


def _shift_prev(a, keep):
    # out[:, i] = a[:, i - 1] inside each segment, 0 at segment start.
    return pltpu.roll(a, shift=1, axis=1) * keep


def _lane_geometry(tot, L):
    """Per-lane position-in-segment and the +-1-tap keep masks, generated
    in-kernel from iota (no constant operands are DMA'd)."""
    lane = jax.lax.broadcasted_iota(jnp.int32, (1, tot), 1)
    pos = (lane & (L - 1)) if (L & (L - 1)) == 0 else (lane % L)
    keep_next = (pos != L - 1).astype(jnp.float32)
    keep_prev = (pos != 0).astype(jnp.float32)
    return pos, keep_next, keep_prev


# --------------------------------- kernels -----------------------------------

def _kernel_s2(x_ref, w1u_ref, b1_ref, w2s_ref, b2_ref, bu_ref, oe_ref, oo_ref,
               *, L, n_seg, c_in, c_out, rp_in, rp_out, mxu_bf16):
    """stride=2 (upsampling) block.  x_ref: (C_in, TOT); outputs are the even
    / odd planes (C_out, TOT) of the per-sample length-2L result."""
    x = x_ref[...]
    tot = x.shape[-1]
    pos, keep_next, keep_prev = _lane_geometry(tot, L)

    # net[0:2] and upsample[0:2] share the same InstanceNorm + ReLU.
    (h,) = _inorm_planes([x], pos, L, n_seg)
    h = jnp.maximum(h, 0.0)

    # Fused matmul: three k=3/s=2 ConvT taps + the k=1 upsample conv,
    # each tap's row block padded to a sublane multiple (rp_*).
    t = _mm(w1u_ref[...], h, mxu_bf16)                # (3*rp_in + rp_out, TOT)
    b1 = b1_ref[...]
    tap0 = t[0:c_in]
    tap1 = t[rp_in:rp_in + c_in]
    tap2 = t[2 * rp_in:2 * rp_in + c_in]
    u_even = t[3 * rp_in:3 * rp_in + c_out]           # upsample branch (pre-bias)
    e1 = tap1 + b1                                    # output position 2m
    o1 = tap2 + _shift_next(tap0, keep_next) + b1     # output position 2m+1

    # net[3:5]: InstanceNorm over the interleaved length-2L signal + ReLU,
    # via joint even/odd statistics (no lane concatenation).
    g_e, g_o = _inorm_planes([e1, o1], pos, L, n_seg)
    g_e = jnp.maximum(g_e, 0.0)
    g_o = jnp.maximum(g_o, 0.0)

    # net[5]: two half-width fused matmuls of the three k=3/s=1 ConvT taps.
    p_e = _mm(w2s_ref[...], g_e, mxu_bf16)            # (3*rp_out, TOT)
    p_o = _mm(w2s_ref[...], g_o, mxu_bf16)
    a_e, b_e, c_e = (p_e[0:c_out], p_e[rp_out:rp_out + c_out],
                     p_e[2 * rp_out:2 * rp_out + c_out])
    a_o, b_o, c_o = (p_o[0:c_out], p_o[rp_out:rp_out + c_out],
                     p_o[2 * rp_out:2 * rp_out + c_out])
    b2 = b2_ref[...]
    bu = bu_ref[...]
    z_e = a_o + b_e + _shift_prev(c_o, keep_prev)
    z_o = _shift_next(a_e, keep_next) + b_o + c_e

    # Residual (upsample) add: the odd plane receives only the upsample bias.
    oe_ref[...] = (z_e + b2 + u_even + bu).astype(oe_ref.dtype)
    oo_ref[...] = (z_o + b2 + bu).astype(oo_ref.dtype)


def _kernel_s1(x_ref, w1s_ref, b1_ref, w2s_ref, b2_ref, o_ref,
               *, L, n_seg, c_in, c_out, rp_in, rp_out, mxu_bf16):
    """stride=1 block (no upsample branch; the residual is the raw input)."""
    x = x_ref[...]
    tot = x.shape[-1]
    pos, keep_next, keep_prev = _lane_geometry(tot, L)

    (h,) = _inorm_planes([x], pos, L, n_seg)
    h = jnp.maximum(h, 0.0)

    t = _mm(w1s_ref[...], h, mxu_bf16)                # (3*rp_in, TOT)
    h1 = (_shift_next(t[0:c_in], keep_next)
          + t[rp_in:rp_in + c_in]
          + _shift_prev(t[2 * rp_in:2 * rp_in + c_in], keep_prev)
          + b1_ref[...])

    (g,) = _inorm_planes([h1], pos, L, n_seg)
    g = jnp.maximum(g, 0.0)

    p = _mm(w2s_ref[...], g, mxu_bf16)                # (3*rp_out, TOT)
    z = (_shift_next(p[0:c_out], keep_next)
         + p[rp_out:rp_out + c_out]
         + _shift_prev(p[2 * rp_out:2 * rp_out + c_out], keep_prev)
         + b2_ref[...])

    o_ref[...] = (z + x).astype(o_ref.dtype)


# --------------------------------- wrapper -----------------------------------

def _vmem_capacity_bytes():
    try:
        return int(pltpu.get_tpu_info().vmem_capacity_bytes)
    except Exception:
        return 64 * 1024 * 1024       # conservative: v7x per-TensorCore VMEM


def _lane_cap(c_in, c_out, stride, vmem_budget):
    """Largest lane width whose live f32 intermediates + double-buffered I/O
    fit in the given VMEM budget (coarse per-lane byte model)."""
    rp_in, rp_out = _round8(c_in), _round8(c_out)
    if stride == 2:
        per_lane = 4 * (6 * rp_in + (3 * rp_in + rp_out) + 15 * rp_out)
    else:
        per_lane = 4 * (10 * rp_in + 7 * rp_out)
    cap = vmem_budget // max(per_lane, 1)
    cap -= cap % 128
    return int(max(128, min(cap, _ABS_LANE_CAP)))


def _pick_tiling(N, L, lane_cap):
    """Largest batch tile TB (divisor of N) with TB*L a lane-dense multiple of
    128 under the cap.  Only trades down to >=2 grid steps (v7x megacore) when
    the block stays >= 512 lanes (~85%-of-roofline point); on v5e/v6e extra
    steps would just add per-step overhead.  Returns (TB, lane_pad); lane_pad
    > 0 means "no aligned divisor — run one zero-padded block"."""
    cands = [tb for tb in range(1, N + 1)
             if N % tb == 0 and (tb * L) % 128 == 0 and tb * L <= lane_cap]
    if cands:
        best = max(cands)
        if N // best < 2:
            multi = [tb for tb in cands if N // tb >= 2 and tb * L >= 512]
            if multi:
                best = max(multi)
        return best, 0
    # TODO(synk): for huge N*L with no 128-aligned divisor, tile the lane axis
    # itself (two-level pipeline) instead of a single padded block.
    return N, (-(N * L)) % 128


def _pad_rows(m, rows):
    if m.shape[0] == rows:
        return m
    return jnp.concatenate(
        [m, jnp.zeros((rows - m.shape[0], m.shape[1]), m.dtype)], axis=0)


@functools.partial(jax.jit,
                   static_argnames=("stride", "mxu_bf16", "block_batch"))
def preact_trans_resnet_block(x, params, *, stride, mxu_bf16=True,
                              block_batch=None):
    """x: (N, C_in, L) float32 -> (N, C_out, stride*L) float32."""
    assert stride in (1, 2)
    N, C_in, L = x.shape
    C_out = params["w2"].shape[1]
    rp_in, rp_out = _round8(C_in), _round8(C_out)
    f32 = jnp.float32
    wdt = jnp.bfloat16 if mxu_bf16 else f32

    vmem_cap = _vmem_capacity_bytes()
    vmem_limit = int(max(32 << 20, min(3 * vmem_cap // 4, 64 << 20)))
    lane_cap = _lane_cap(C_in, C_out, stride, vmem_limit // 2)

    if block_batch is not None:
        TB, lane_pad = block_batch, 0
        assert N % TB == 0 and (TB * L) % 128 == 0
    else:
        TB, lane_pad = _pick_tiling(N, L, lane_cap)

    total = N * L + lane_pad
    TOT = TB * L if lane_pad == 0 else total
    n_blocks = total // TOT
    n_seg = -(-TOT // L)

    # Re-layout activations: (N, C, L) -> (C, N*L) planar slab
    # (lanes = batch x length); pad the lane axis to a 128 multiple if needed
    # so every store stays lane-dense (unmasked vst).
    x2d = jnp.transpose(x.astype(f32), (1, 0, 2)).reshape(C_in, N * L)
    if lane_pad:
        x2d = jnp.pad(x2d, ((0, 0), (0, lane_pad)))

    # Stack ConvTranspose1d taps (torch layout (in, out, K)) into row-stacked
    # weight matrices; each tap block padded to a multiple of 8 rows so the
    # in-kernel row slices stay sublane-aligned for any channel count.
    w1 = params["w1"].astype(f32)                      # (C_in, C_in, 3)
    w2 = params["w2"].astype(f32)                      # (C_in, C_out, 3)
    taps1 = [_pad_rows(w1[:, :, k].T, rp_in) for k in range(3)]
    w2s = jnp.concatenate([_pad_rows(w2[:, :, k].T, rp_out) for k in range(3)],
                          axis=0).astype(wdt)          # (3*rp_out, C_in)
    b1 = params["b1"].reshape(C_in, 1).astype(f32)
    b2 = params["b2"].reshape(C_out, 1).astype(f32)

    cparams = pltpu.CompilerParams(dimension_semantics=("parallel",),
                                   vmem_limit_bytes=vmem_limit)

    if stride == 2:
        wu = _pad_rows(params["wu"][:, :, 0].T.astype(f32), rp_out)
        w1u = jnp.concatenate(taps1 + [wu], axis=0).astype(wdt)
        bu = params["bu"].reshape(C_out, 1).astype(f32)
        kern = functools.partial(_kernel_s2, L=L, n_seg=n_seg, c_in=C_in,
                                 c_out=C_out, rp_in=rp_in, rp_out=rp_out,
                                 mxu_bf16=mxu_bf16)
        oe, oo = pl.pallas_call(
            kern,
            grid=(n_blocks,),
            in_specs=[
                pl.BlockSpec((C_in, TOT), lambda n: (0, n)),                 # x
                pl.BlockSpec((3 * rp_in + rp_out, C_in), lambda n: (0, 0)),  # W1|Wu
                pl.BlockSpec((C_in, 1), lambda n: (0, 0)),                   # b1
                pl.BlockSpec((3 * rp_out, C_in), lambda n: (0, 0)),          # W2
                pl.BlockSpec((C_out, 1), lambda n: (0, 0)),                  # b2
                pl.BlockSpec((C_out, 1), lambda n: (0, 0)),                  # bu
            ],
            out_specs=[
                pl.BlockSpec((C_out, TOT), lambda n: (0, n)),
                pl.BlockSpec((C_out, TOT), lambda n: (0, n)),
            ],
            out_shape=[
                jax.ShapeDtypeStruct((C_out, total), f32),
                jax.ShapeDtypeStruct((C_out, total), f32),
            ],
            compiler_params=cparams,
        )(x2d, w1u, b1, w2s, b2, bu)
        oe = oe[:, :N * L]
        oo = oo[:, :N * L]
        # Glue: interleave even/odd planes and return the public (N,C,2L) layout.
        out = jnp.stack([oe, oo], axis=-1).reshape(C_out, N, 2 * L)
        return jnp.transpose(out, (1, 0, 2))
    else:
        assert C_out == C_in, "stride=1 residual add requires c_out == c_in"
        w1s = jnp.concatenate(taps1, axis=0).astype(wdt)   # (3*rp_in, C_in)
        kern = functools.partial(_kernel_s1, L=L, n_seg=n_seg, c_in=C_in,
                                 c_out=C_out, rp_in=rp_in, rp_out=rp_out,
                                 mxu_bf16=mxu_bf16)
        out2d = pl.pallas_call(
            kern,
            grid=(n_blocks,),
            in_specs=[
                pl.BlockSpec((C_in, TOT), lambda n: (0, n)),
                pl.BlockSpec((3 * rp_in, C_in), lambda n: (0, 0)),
                pl.BlockSpec((C_in, 1), lambda n: (0, 0)),
                pl.BlockSpec((3 * rp_out, C_in), lambda n: (0, 0)),
                pl.BlockSpec((C_out, 1), lambda n: (0, 0)),
            ],
            out_specs=pl.BlockSpec((C_out, TOT), lambda n: (0, n)),
            out_shape=jax.ShapeDtypeStruct((C_out, total), f32),
            compiler_params=cparams,
        )(x2d, w1s, b1, w2s, b2)
        out2d = out2d[:, :N * L]
        out = out2d.reshape(C_out, N, L)
        return jnp.transpose(out, (1, 0, 2))


# ----------------------- pure-JAX reference (for checking) -------------------

def _convT1d_ref(x, w, b, stride, padding, output_padding):
    # Scatter-style definition of ConvTranspose1d (matches PyTorch semantics).
    N, Cin, L = x.shape
    _, Cout, K = w.shape
    Lout = (L - 1) * stride - 2 * padding + (K - 1) + output_padding + 1
    full_len = max((L - 1) * stride + K, padding + Lout)
    full = jnp.zeros((N, Cout, full_len), x.dtype)
    for k in range(K):
        contrib = jnp.einsum("ncl,cd->ndl", x, w[:, :, k],
                             precision=jax.lax.Precision.HIGHEST)
        full = full.at[:, :, k:k + (L - 1) * stride + 1:stride].add(contrib)
    return full[:, :, padding:padding + Lout] + b[None, :, None]


def _inorm_ref(x):
    m = x.mean(axis=-1, keepdims=True)
    v = ((x - m) ** 2).mean(axis=-1, keepdims=True)
    return (x - m) / jnp.sqrt(v + EPS)


def block_ref(x, params, stride):
    h = jnp.maximum(_inorm_ref(x), 0.0)
    op1 = 1 if stride == 2 else 0
    h = _convT1d_ref(h, params["w1"], params["b1"], stride, 1, op1)
    h = jnp.maximum(_inorm_ref(h), 0.0)
    z = _convT1d_ref(h, params["w2"], params["b2"], 1, 1, 0)
    if stride == 2:
        xu = jnp.maximum(_inorm_ref(x), 0.0)
        xu = _convT1d_ref(xu, params["wu"], params["bu"], 2, 0, 1)
    else:
        xu = x
    return z + xu


# ------------------------------ param init -----------------------------------

def init_params(key, c_in, c_out, stride):
    ks = jax.random.split(key, 6)

    def u(k, shape, fan):
        bound = 1.0 / np.sqrt(fan)
        return jax.random.uniform(k, shape, jnp.float32, -bound, bound)

    p = {
        "w1": u(ks[0], (c_in, c_in, 3), c_in * 3),
        "b1": u(ks[1], (c_in,), c_in * 3),
        "w2": u(ks[2], (c_in, c_out, 3), c_in * 3),
        "b2": u(ks[3], (c_out,), c_in * 3),
    }
    if stride == 2:
        p["wu"] = u(ks[4], (c_in, c_out, 1), c_in)
        p["bu"] = u(ks[5], (c_out,), c_in)
    return p


# ----------------------------------- main ------------------------------------

if __name__ == "__main__":
    key = jax.random.PRNGKey(0)
    kx, kp2, kp1 = jax.random.split(key, 3)

    # stride=2 (upsampling) block: (16, 8, 16) -> (16, 16, 32).
    N, C_in, C_out, L = 16, 8, 16, 16
    x = jax.random.normal(kx, (N, C_in, L), jnp.float32)
    params2 = init_params(kp2, C_in, C_out, stride=2)
    ref2 = block_ref(x, params2, stride=2)

    out2 = jax.block_until_ready(
        preact_trans_resnet_block(x, params2, stride=2, mxu_bf16=False))
    np.testing.assert_allclose(np.asarray(out2), np.asarray(ref2),
                               rtol=1e-3, atol=1e-3)
    out2_fast = jax.block_until_ready(
        preact_trans_resnet_block(x, params2, stride=2, mxu_bf16=True))
    np.testing.assert_allclose(np.asarray(out2_fast), np.asarray(ref2),
                               rtol=5e-2, atol=5e-2)

    # stride=1 block (residual requires c_out == c_in): (16, 8, 16) -> (16, 8, 16).
    params1 = init_params(kp1, C_in, C_in, stride=1)
    ref1 = block_ref(x, params1, stride=1)

    out1 = jax.block_until_ready(
        preact_trans_resnet_block(x, params1, stride=1, mxu_bf16=False))
    np.testing.assert_allclose(np.asarray(out1), np.asarray(ref1),
                               rtol=1e-3, atol=1e-3)
    out1_fast = jax.block_until_ready(
        preact_trans_resnet_block(x, params1, stride=1, mxu_bf16=True))
    np.testing.assert_allclose(np.asarray(out1_fast), np.asarray(ref1),
                               rtol=5e-2, atol=5e-2)

    print("KERNEL_OK")
</pallas_src>

<mosaic_0001>
module attributes {stable_mosaic.version = 11 : i64} {
  func.func @_kernel_s2(%arg0: i32, %arg1: memref<8x256xf32, #tpu.memory_space<vmem>>, %arg2: memref<40x8xf32, #tpu.memory_space<vmem>>, %arg3: memref<8x1xf32, #tpu.memory_space<vmem>>, %arg4: memref<48x8xf32, #tpu.memory_space<vmem>>, %arg5: memref<16x1xf32, #tpu.memory_space<vmem>>, %arg6: memref<16x1xf32, #tpu.memory_space<vmem>>, %arg7: memref<16x256xf32, #tpu.memory_space<vmem>>, %arg8: memref<16x256xf32, #tpu.memory_space<vmem>>) attributes {dimension_semantics = [#tpu.dimension_semantics<parallel>], iteration_bounds = array<i64: 1>, scalar_prefetch = 0 : i64, scratch_operands = 0 : i64, tpu.core_type = #tpu.core_type<tc>, window_params = [{transform_indices = @transform_0, window_bounds = array<i64: 8, 256>}, {pipeline_mode = #tpu.pipeline_mode<synchronous>, transform_indices = @transform_1, window_bounds = array<i64: 40, 8>}, {pipeline_mode = #tpu.pipeline_mode<synchronous>, transform_indices = @transform_2, window_bounds = array<i64: 8, 1>}, {pipeline_mode = #tpu.pipeline_mode<synchronous>, transform_indices = @transform_3, window_bounds = array<i64: 48, 8>}, {pipeline_mode = #tpu.pipeline_mode<synchronous>, transform_indices = @transform_4, window_bounds = array<i64: 16, 1>}, {pipeline_mode = #tpu.pipeline_mode<synchronous>, transform_indices = @transform_5, window_bounds = array<i64: 16, 1>}, {transform_indices = @transform_6, window_bounds = array<i64: 16, 256>}, {transform_indices = @transform_7, window_bounds = array<i64: 16, 256>}]} {
    %c0 = arith.constant 0 : index
    %c0_0 = arith.constant 0 : index
    %0 = vector.load %arg1[%c0, %c0_0] : memref<8x256xf32, #tpu.memory_space<vmem>>, vector<8x256xf32>
    %1 = tpu.iota {dimensions = array<i32: 1>} : vector<1x256xi32>
    %c15_i32 = arith.constant 15 : i32
    %2 = vector.broadcast %c15_i32 : i32 to vector<1x256xi32>
    %3 = arith.andi %1, %2 : vector<1x256xi32>
    %c15_i32_1 = arith.constant 15 : i32
    %4 = vector.broadcast %c15_i32_1 : i32 to vector<1x256xi32>
    %5 = arith.cmpi ne, %3, %4 : vector<1x256xi32>
    %6 = arith.extui %5 : vector<1x256xi1> to vector<1x256xi32>
    %7 = arith.sitofp %6 : vector<1x256xi32> to vector<1x256xf32>
    %c0_i32 = arith.constant 0 : i32
    %8 = vector.broadcast %c0_i32 : i32 to vector<1x256xi32>
    %9 = arith.cmpi ne, %3, %8 : vector<1x256xi32>
    %10 = arith.extui %9 : vector<1x256xi1> to vector<1x256xi32>
    %11 = arith.sitofp %10 : vector<1x256xi32> to vector<1x256xf32>
    %c255_i32 = arith.constant 255 : i32
    %12 = tpu.dynamic_rotate %0 by %c255_i32 dim 1 : vector<8x256xf32>, i32 -> vector<8x256xf32>
    %c1_i32 = arith.constant 1 : i32
    %13 = tpu.dynamic_rotate %0 by %c1_i32 dim 1 : vector<8x256xf32>, i32 -> vector<8x256xf32>
    %c1_i32_2 = arith.constant 1 : i32
    %14 = vector.broadcast %c1_i32_2 : i32 to vector<1x256xi32>
    %15 = arith.andi %3, %14 : vector<1x256xi32>
    %c0_i32_3 = arith.constant 0 : i32
    %16 = vector.broadcast %c0_i32_3 : i32 to vector<1x256xi32>
    %17 = arith.cmpi eq, %15, %16 : vector<1x256xi32>
    %18 = vector.shape_cast %17 : vector<1x256xi1> to vector<1x256xi1>
    %19 = vector.broadcast %18 : vector<1x256xi1> to vector<8x256xi1>
    %20 = arith.select %19, %12, %13 : vector<8x256xi1>, vector<8x256xf32>
    %21 = arith.addf %0, %20 : vector<8x256xf32>
    %c254_i32 = arith.constant 254 : i32
    %22 = tpu.dynamic_rotate %21 by %c254_i32 dim 1 : vector<8x256xf32>, i32 -> vector<8x256xf32>
    %c2_i32 = arith.constant 2 : i32
    %23 = tpu.dynamic_rotate %21 by %c2_i32 dim 1 : vector<8x256xf32>, i32 -> vector<8x256xf32>
    %c2_i32_4 = arith.constant 2 : i32
    %24 = vector.broadcast %c2_i32_4 : i32 to vector<1x256xi32>
    %25 = arith.andi %3, %24 : vector<1x256xi32>
    %c0_i32_5 = arith.constant 0 : i32
    %26 = vector.broadcast %c0_i32_5 : i32 to vector<1x256xi32>
    %27 = arith.cmpi eq, %25, %26 : vector<1x256xi32>
    %28 = vector.shape_cast %27 : vector<1x256xi1> to vector<1x256xi1>
    %29 = vector.broadcast %28 : vector<1x256xi1> to vector<8x256xi1>
    %30 = arith.select %29, %22, %23 : vector<8x256xi1>, vector<8x256xf32>
    %31 = arith.addf %21, %30 : vector<8x256xf32>
    %c252_i32 = arith.constant 252 : i32
    %32 = tpu.dynamic_rotate %31 by %c252_i32 dim 1 : vector<8x256xf32>, i32 -> vector<8x256xf32>
    %c4_i32 = arith.constant 4 : i32
    %33 = tpu.dynamic_rotate %31 by %c4_i32 dim 1 : vector<8x256xf32>, i32 -> vector<8x256xf32>
    %c4_i32_6 = arith.constant 4 : i32
    %34 = vector.broadcast %c4_i32_6 : i32 to vector<1x256xi32>
    %35 = arith.andi %3, %34 : vector<1x256xi32>
    %c0_i32_7 = arith.constant 0 : i32
    %36 = vector.broadcast %c0_i32_7 : i32 to vector<1x256xi32>
    %37 = arith.cmpi eq, %35, %36 : vector<1x256xi32>
    %38 = vector.shape_cast %37 : vector<1x256xi1> to vector<1x256xi1>
    %39 = vector.broadcast %38 : vector<1x256xi1> to vector<8x256xi1>
    %40 = arith.select %39, %32, %33 : vector<8x256xi1>, vector<8x256xf32>
    %41 = arith.addf %31, %40 : vector<8x256xf32>
    %c248_i32 = arith.constant 248 : i32
    %42 = tpu.dynamic_rotate %41 by %c248_i32 dim 1 : vector<8x256xf32>, i32 -> vector<8x256xf32>
    %c8_i32 = arith.constant 8 : i32
    %43 = tpu.dynamic_rotate %41 by %c8_i32 dim 1 : vector<8x256xf32>, i32 -> vector<8x256xf32>
    %c8_i32_8 = arith.constant 8 : i32
    %44 = vector.broadcast %c8_i32_8 : i32 to vector<1x256xi32>
    %45 = arith.andi %3, %44 : vector<1x256xi32>
    %c0_i32_9 = arith.constant 0 : i32
    %46 = vector.broadcast %c0_i32_9 : i32 to vector<1x256xi32>
    %47 = arith.cmpi eq, %45, %46 : vector<1x256xi32>
    %48 = vector.shape_cast %47 : vector<1x256xi1> to vector<1x256xi1>
    %49 = vector.broadcast %48 : vector<1x256xi1> to vector<8x256xi1>
    %50 = arith.select %49, %42, %43 : vector<8x256xi1>, vector<8x256xf32>
    %51 = arith.addf %41, %50 : vector<8x256xf32>
    %cst = arith.constant 0.000000e+00 : f32
    %52 = vector.broadcast %cst : f32 to vector<8x256xf32>
    %53 = arith.addf %52, %51 : vector<8x256xf32>
    %cst_10 = arith.constant 6.250000e-02 : f32
    %54 = vector.broadcast %cst_10 : f32 to vector<8x256xf32>
    %55 = arith.mulf %53, %54 : vector<8x256xf32>
    %56 = arith.subf %0, %55 : vector<8x256xf32>
    %57 = arith.mulf %56, %56 : vector<8x256xf32>
    %c255_i32_11 = arith.constant 255 : i32
    %58 = tpu.dynamic_rotate %57 by %c255_i32_11 dim 1 : vector<8x256xf32>, i32 -> vector<8x256xf32>
    %c1_i32_12 = arith.constant 1 : i32
    %59 = tpu.dynamic_rotate %57 by %c1_i32_12 dim 1 : vector<8x256xf32>, i32 -> vector<8x256xf32>
    %c1_i32_13 = arith.constant 1 : i32
    %60 = vector.broadcast %c1_i32_13 : i32 to vector<1x256xi32>
    %61 = arith.andi %3, %60 : vector<1x256xi32>
    %c0_i32_14 = arith.constant 0 : i32
    %62 = vector.broadcast %c0_i32_14 : i32 to vector<1x256xi32>
    %63 = arith.cmpi eq, %61, %62 : vector<1x256xi32>
    %64 = vector.shape_cast %63 : vector<1x256xi1> to vector<1x256xi1>
    %65 = vector.broadcast %64 : vector<1x256xi1> to vector<8x256xi1>
    %66 = arith.select %65, %58, %59 : vector<8x256xi1>, vector<8x256xf32>
    %67 = arith.addf %57, %66 : vector<8x256xf32>
    %c254_i32_15 = arith.constant 254 : i32
    %68 = tpu.dynamic_rotate %67 by %c254_i32_15 dim 1 : vector<8x256xf32>, i32 -> vector<8x256xf32>
    %c2_i32_16 = arith.constant 2 : i32
    %69 = tpu.dynamic_rotate %67 by %c2_i32_16 dim 1 : vector<8x256xf32>, i32 -> vector<8x256xf32>
    %c2_i32_17 = arith.constant 2 : i32
    %70 = vector.broadcast %c2_i32_17 : i32 to vector<1x256xi32>
    %71 = arith.andi %3, %70 : vector<1x256xi32>
    %c0_i32_18 = arith.constant 0 : i32
    %72 = vector.broadcast %c0_i32_18 : i32 to vector<1x256xi32>
    %73 = arith.cmpi eq, %71, %72 : vector<1x256xi32>
    %74 = vector.shape_cast %73 : vector<1x256xi1> to vector<1x256xi1>
    %75 = vector.broadcast %74 : vector<1x256xi1> to vector<8x256xi1>
    %76 = arith.select %75, %68, %69 : vector<8x256xi1>, vector<8x256xf32>
    %77 = arith.addf %67, %76 : vector<8x256xf32>
    %c252_i32_19 = arith.constant 252 : i32
    %78 = tpu.dynamic_rotate %77 by %c252_i32_19 dim 1 : vector<8x256xf32>, i32 -> vector<8x256xf32>
    %c4_i32_20 = arith.constant 4 : i32
    %79 = tpu.dynamic_rotate %77 by %c4_i32_20 dim 1 : vector<8x256xf32>, i32 -> vector<8x256xf32>
    %c4_i32_21 = arith.constant 4 : i32
    %80 = vector.broadcast %c4_i32_21 : i32 to vector<1x256xi32>
    %81 = arith.andi %3, %80 : vector<1x256xi32>
    %c0_i32_22 = arith.constant 0 : i32
    %82 = vector.broadcast %c0_i32_22 : i32 to vector<1x256xi32>
    %83 = arith.cmpi eq, %81, %82 : vector<1x256xi32>
    %84 = vector.shape_cast %83 : vector<1x256xi1> to vector<1x256xi1>
    %85 = vector.broadcast %84 : vector<1x256xi1> to vector<8x256xi1>
    %86 = arith.select %85, %78, %79 : vector<8x256xi1>, vector<8x256xf32>
    %87 = arith.addf %77, %86 : vector<8x256xf32>
    %c248_i32_23 = arith.constant 248 : i32
    %88 = tpu.dynamic_rotate %87 by %c248_i32_23 dim 1 : vector<8x256xf32>, i32 -> vector<8x256xf32>
    %c8_i32_24 = arith.constant 8 : i32
    %89 = tpu.dynamic_rotate %87 by %c8_i32_24 dim 1 : vector<8x256xf32>, i32 -> vector<8x256xf32>
    %c8_i32_25 = arith.constant 8 : i32
    %90 = vector.broadcast %c8_i32_25 : i32 to vector<1x256xi32>
    %91 = arith.andi %3, %90 : vector<1x256xi32>
    %c0_i32_26 = arith.constant 0 : i32
    %92 = vector.broadcast %c0_i32_26 : i32 to vector<1x256xi32>
    %93 = arith.cmpi eq, %91, %92 : vector<1x256xi32>
    %94 = vector.shape_cast %93 : vector<1x256xi1> to vector<1x256xi1>
    %95 = vector.broadcast %94 : vector<1x256xi1> to vector<8x256xi1>
    %96 = arith.select %95, %88, %89 : vector<8x256xi1>, vector<8x256xf32>
    %97 = arith.addf %87, %96 : vector<8x256xf32>
    %cst_27 = arith.constant 0.000000e+00 : f32
    %98 = vector.broadcast %cst_27 : f32 to vector<8x256xf32>
    %99 = arith.addf %98, %97 : vector<8x256xf32>
    %cst_28 = arith.constant 6.250000e-02 : f32
    %100 = vector.broadcast %cst_28 : f32 to vector<8x256xf32>
    %101 = arith.mulf %99, %100 : vector<8x256xf32>
    %cst_29 = arith.constant 9.99999974E-6 : f32
    %102 = vector.broadcast %cst_29 : f32 to vector<8x256xf32>
    %103 = arith.addf %101, %102 : vector<8x256xf32>
    %104 = math.rsqrt %103 : vector<8x256xf32>
    %105 = arith.mulf %56, %104 : vector<8x256xf32>
    %cst_30 = arith.constant 0.000000e+00 : f32
    %106 = vector.broadcast %cst_30 : f32 to vector<8x256xf32>
    %107 = arith.maximumf %105, %106 : vector<8x256xf32>
    %c0_31 = arith.constant 0 : index
    %c0_32 = arith.constant 0 : index
    %108 = vector.load %arg2[%c0_31, %c0_32] : memref<40x8xf32, #tpu.memory_space<vmem>>, vector<40x8xf32>
    %cst_33 = arith.constant dense<0.000000e+00> : vector<40x256xf32>
    %109 = tpu.matmul %108, %107, %cst_33 {dimension_numbers = #tpu.dot_dimension_numbers<[1], [0], [0], [1], [0, 0, 1, 1], [], []>, precision = #tpu.contract_precision<fp32>} : vector<40x8xf32>, vector<8x256xf32>, vector<40x256xf32> -> vector<40x256xf32>
    %c0_34 = arith.constant 0 : index
    %c0_35 = arith.constant 0 : index
    %110 = vector.load %arg3[%c0_34, %c0_35] : memref<8x1xf32, #tpu.memory_space<vmem>>, vector<8x1xf32>
    %111 = vector.extract_strided_slice %109 {offsets = [0, 0], sizes = [8, 256], strides = [1, 1]} : vector<40x256xf32> to vector<8x256xf32>
    %112 = vector.extract_strided_slice %109 {offsets = [8, 0], sizes = [8, 256], strides = [1, 1]} : vector<40x256xf32> to vector<8x256xf32>
    %113 = vector.extract_strided_slice %109 {offsets = [16, 0], sizes = [8, 256], strides = [1, 1]} : vector<40x256xf32> to vector<8x256xf32>
    %114 = vector.extract_strided_slice %109 {offsets = [24, 0], sizes = [16, 256], strides = [1, 1]} : vector<40x256xf32> to vector<16x256xf32>
    %115 = vector.broadcast %110 : vector<8x1xf32> to vector<8x256xf32>
    %116 = arith.addf %112, %115 : vector<8x256xf32>
    %c255_i32_36 = arith.constant 255 : i32
    %117 = tpu.dynamic_rotate %111 by %c255_i32_36 dim 1 : vector<8x256xf32>, i32 -> vector<8x256xf32>
    %118 = vector.broadcast %7 : vector<1x256xf32> to vector<8x256xf32>
    %119 = arith.mulf %117, %118 : vector<8x256xf32>
    %120 = arith.addf %113, %119 : vector<8x256xf32>
    %121 = vector.broadcast %110 : vector<8x1xf32> to vector<8x256xf32>
    %122 = arith.addf %120, %121 : vector<8x256xf32>
    %c255_i32_37 = arith.constant 255 : i32
    %123 = tpu.dynamic_rotate %116 by %c255_i32_37 dim 1 : vector<8x256xf32>, i32 -> vector<8x256xf32>
    %c1_i32_38 = arith.constant 1 : i32
    %124 = tpu.dynamic_rotate %116 by %c1_i32_38 dim 1 : vector<8x256xf32>, i32 -> vector<8x256xf32>
    %c1_i32_39 = arith.constant 1 : i32
    %125 = vector.broadcast %c1_i32_39 : i32 to vector<1x256xi32>
    %126 = arith.andi %3, %125 : vector<1x256xi32>
    %c0_i32_40 = arith.constant 0 : i32
    %127 = vector.broadcast %c0_i32_40 : i32 to vector<1x256xi32>
    %128 = arith.cmpi eq, %126, %127 : vector<1x256xi32>
    %129 = vector.shape_cast %128 : vector<1x256xi1> to vector<1x256xi1>
    %130 = vector.broadcast %129 : vector<1x256xi1> to vector<8x256xi1>
    %131 = arith.select %130, %123, %124 : vector<8x256xi1>, vector<8x256xf32>
    %132 = arith.addf %116, %131 : vector<8x256xf32>
    %c254_i32_41 = arith.constant 254 : i32
    %133 = tpu.dynamic_rotate %132 by %c254_i32_41 dim 1 : vector<8x256xf32>, i32 -> vector<8x256xf32>
    %c2_i32_42 = arith.constant 2 : i32
    %134 = tpu.dynamic_rotate %132 by %c2_i32_42 dim 1 : vector<8x256xf32>, i32 -> vector<8x256xf32>
    %c2_i32_43 = arith.constant 2 : i32
    %135 = vector.broadcast %c2_i32_43 : i32 to vector<1x256xi32>
    %136 = arith.andi %3, %135 : vector<1x256xi32>
    %c0_i32_44 = arith.constant 0 : i32
    %137 = vector.broadcast %c0_i32_44 : i32 to vector<1x256xi32>
    %138 = arith.cmpi eq, %136, %137 : vector<1x256xi32>
    %139 = vector.shape_cast %138 : vector<1x256xi1> to vector<1x256xi1>
    %140 = vector.broadcast %139 : vector<1x256xi1> to vector<8x256xi1>
    %141 = arith.select %140, %133, %134 : vector<8x256xi1>, vector<8x256xf32>
    %142 = arith.addf %132, %141 : vector<8x256xf32>
    %c252_i32_45 = arith.constant 252 : i32
    %143 = tpu.dynamic_rotate %142 by %c252_i32_45 dim 1 : vector<8x256xf32>, i32 -> vector<8x256xf32>
    %c4_i32_46 = arith.constant 4 : i32
    %144 = tpu.dynamic_rotate %142 by %c4_i32_46 dim 1 : vector<8x256xf32>, i32 -> vector<8x256xf32>
    %c4_i32_47 = arith.constant 4 : i32
    %145 = vector.broadcast %c4_i32_47 : i32 to vector<1x256xi32>
    %146 = arith.andi %3, %145 : vector<1x256xi32>
    %c0_i32_48 = arith.constant 0 : i32
    %147 = vector.broadcast %c0_i32_48 : i32 to vector<1x256xi32>
    %148 = arith.cmpi eq, %146, %147 : vector<1x256xi32>
    %149 = vector.shape_cast %148 : vector<1x256xi1> to vector<1x256xi1>
    %150 = vector.broadcast %149 : vector<1x256xi1> to vector<8x256xi1>
    %151 = arith.select %150, %143, %144 : vector<8x256xi1>, vector<8x256xf32>
    %152 = arith.addf %142, %151 : vector<8x256xf32>
    %c248_i32_49 = arith.constant 248 : i32
    %153 = tpu.dynamic_rotate %152 by %c248_i32_49 dim 1 : vector<8x256xf32>, i32 -> vector<8x256xf32>
    %c8_i32_50 = arith.constant 8 : i32
    %154 = tpu.dynamic_rotate %152 by %c8_i32_50 dim 1 : vector<8x256xf32>, i32 -> vector<8x256xf32>
    %c8_i32_51 = arith.constant 8 : i32
    %155 = vector.broadcast %c8_i32_51 : i32 to vector<1x256xi32>
    %156 = arith.andi %3, %155 : vector<1x256xi32>
    %c0_i32_52 = arith.constant 0 : i32
    %157 = vector.broadcast %c0_i32_52 : i32 to vector<1x256xi32>
    %158 = arith.cmpi eq, %156, %157 : vector<1x256xi32>
    %159 = vector.shape_cast %158 : vector<1x256xi1> to vector<1x256xi1>
    %160 = vector.broadcast %159 : vector<1x256xi1> to vector<8x256xi1>
    %161 = arith.select %160, %153, %154 : vector<8x256xi1>, vector<8x256xf32>
    %162 = arith.addf %152, %161 : vector<8x256xf32>
    %cst_53 = arith.constant 0.000000e+00 : f32
    %163 = vector.broadcast %cst_53 : f32 to vector<8x256xf32>
    %164 = arith.addf %163, %162 : vector<8x256xf32>
    %c255_i32_54 = arith.constant 255 : i32
    %165 = tpu.dynamic_rotate %122 by %c255_i32_54 dim 1 : vector<8x256xf32>, i32 -> vector<8x256xf32>
    %c1_i32_55 = arith.constant 1 : i32
    %166 = tpu.dynamic_rotate %122 by %c1_i32_55 dim 1 : vector<8x256xf32>, i32 -> vector<8x256xf32>
    %c1_i32_56 = arith.constant 1 : i32
    %167 = vector.broadcast %c1_i32_56 : i32 to vector<1x256xi32>
    %168 = arith.andi %3, %167 : vector<1x256xi32>
    %c0_i32_57 = arith.constant 0 : i32
    %169 = vector.broadcast %c0_i32_57 : i32 to vector<1x256xi32>
    %170 = arith.cmpi eq, %168, %169 : vector<1x256xi32>
    %171 = vector.shape_cast %170 : vector<1x256xi1> to vector<1x256xi1>
    %172 = vector.broadcast %171 : vector<1x256xi1> to vector<8x256xi1>
    %173 = arith.select %172, %165, %166 : vector<8x256xi1>, vector<8x256xf32>
    %174 = arith.addf %122, %173 : vector<8x256xf32>
    %c254_i32_58 = arith.constant 254 : i32
    %175 = tpu.dynamic_rotate %174 by %c254_i32_58 dim 1 : vector<8x256xf32>, i32 -> vector<8x256xf32>
    %c2_i32_59 = arith.constant 2 : i32
    %176 = tpu.dynamic_rotate %174 by %c2_i32_59 dim 1 : vector<8x256xf32>, i32 -> vector<8x256xf32>
    %c2_i32_60 = arith.constant 2 : i32
    %177 = vector.broadcast %c2_i32_60 : i32 to vector<1x256xi32>
    %178 = arith.andi %3, %177 : vector<1x256xi32>
    %c0_i32_61 = arith.constant 0 : i32
    %179 = vector.broadcast %c0_i32_61 : i32 to vector<1x256xi32>
    %180 = arith.cmpi eq, %178, %179 : vector<1x256xi32>
    %181 = vector.shape_cast %180 : vector<1x256xi1> to vector<1x256xi1>
    %182 = vector.broadcast %181 : vector<1x256xi1> to vector<8x256xi1>
    %183 = arith.select %182, %175, %176 : vector<8x256xi1>, vector<8x256xf32>
    %184 = arith.addf %174, %183 : vector<8x256xf32>
    %c252_i32_62 = arith.constant 252 : i32
    %185 = tpu.dynamic_rotate %184 by %c252_i32_62 dim 1 : vector<8x256xf32>, i32 -> vector<8x256xf32>
    %c4_i32_63 = arith.constant 4 : i32
    %186 = tpu.dynamic_rotate %184 by %c4_i32_63 dim 1 : vector<8x256xf32>, i32 -> vector<8x256xf32>
    %c4_i32_64 = arith.constant 4 : i32
    %187 = vector.broadcast %c4_i32_64 : i32 to vector<1x256xi32>
    %188 = arith.andi %3, %187 : vector<1x256xi32>
    %c0_i32_65 = arith.constant 0 : i32
    %189 = vector.broadcast %c0_i32_65 : i32 to vector<1x256xi32>
    %190 = arith.cmpi eq, %188, %189 : vector<1x256xi32>
    %191 = vector.shape_cast %190 : vector<1x256xi1> to vector<1x256xi1>
    %192 = vector.broadcast %191 : vector<1x256xi1> to vector<8x256xi1>
    %193 = arith.select %192, %185, %186 : vector<8x256xi1>, vector<8x256xf32>
    %194 = arith.addf %184, %193 : vector<8x256xf32>
    %c248_i32_66 = arith.constant 248 : i32
    %195 = tpu.dynamic_rotate %194 by %c248_i32_66 dim 1 : vector<8x256xf32>, i32 -> vector<8x256xf32>
    %c8_i32_67 = arith.constant 8 : i32
    %196 = tpu.dynamic_rotate %194 by %c8_i32_67 dim 1 : vector<8x256xf32>, i32 -> vector<8x256xf32>
    %c8_i32_68 = arith.constant 8 : i32
    %197 = vector.broadcast %c8_i32_68 : i32 to vector<1x256xi32>
    %198 = arith.andi %3, %197 : vector<1x256xi32>
    %c0_i32_69 = arith.constant 0 : i32
    %199 = vector.broadcast %c0_i32_69 : i32 to vector<1x256xi32>
    %200 = arith.cmpi eq, %198, %199 : vector<1x256xi32>
    %201 = vector.shape_cast %200 : vector<1x256xi1> to vector<1x256xi1>
    %202 = vector.broadcast %201 : vector<1x256xi1> to vector<8x256xi1>
    %203 = arith.select %202, %195, %196 : vector<8x256xi1>, vector<8x256xf32>
    %204 = arith.addf %194, %203 : vector<8x256xf32>
    %205 = arith.addf %164, %204 : vector<8x256xf32>
    %cst_70 = arith.constant 3.125000e-02 : f32
    %206 = vector.broadcast %cst_70 : f32 to vector<8x256xf32>
    %207 = arith.mulf %205, %206 : vector<8x256xf32>
    %208 = arith.subf %116, %207 : vector<8x256xf32>
    %209 = arith.subf %122, %207 : vector<8x256xf32>
    %210 = arith.mulf %208, %208 : vector<8x256xf32>
    %c255_i32_71 = arith.constant 255 : i32
    %211 = tpu.dynamic_rotate %210 by %c255_i32_71 dim 1 : vector<8x256xf32>, i32 -> vector<8x256xf32>
    %c1_i32_72 = arith.constant 1 : i32
    %212 = tpu.dynamic_rotate %210 by %c1_i32_72 dim 1 : vector<8x256xf32>, i32 -> vector<8x256xf32>
    %c1_i32_73 = arith.constant 1 : i32
    %213 = vector.broadcast %c1_i32_73 : i32 to vector<1x256xi32>
    %214 = arith.andi %3, %213 : vector<1x256xi32>
    %c0_i32_74 = arith.constant 0 : i32
    %215 = vector.broadcast %c0_i32_74 : i32 to vector<1x256xi32>
    %216 = arith.cmpi eq, %214, %215 : vector<1x256xi32>
    %217 = vector.shape_cast %216 : vector<1x256xi1> to vector<1x256xi1>
    %218 = vector.broadcast %217 : vector<1x256xi1> to vector<8x256xi1>
    %219 = arith.select %218, %211, %212 : vector<8x256xi1>, vector<8x256xf32>
    %220 = arith.addf %210, %219 : vector<8x256xf32>
    %c254_i32_75 = arith.constant 254 : i32
    %221 = tpu.dynamic_rotate %220 by %c254_i32_75 dim 1 : vector<8x256xf32>, i32 -> vector<8x256xf32>
    %c2_i32_76 = arith.constant 2 : i32
    %222 = tpu.dynamic_rotate %220 by %c2_i32_76 dim 1 : vector<8x256xf32>, i32 -> vector<8x256xf32>
    %c2_i32_77 = arith.constant 2 : i32
    %223 = vector.broadcast %c2_i32_77 : i32 to vector<1x256xi32>
    %224 = arith.andi %3, %223 : vector<1x256xi32>
    %c0_i32_78 = arith.constant 0 : i32
    %225 = vector.broadcast %c0_i32_78 : i32 to vector<1x256xi32>
    %226 = arith.cmpi eq, %224, %225 : vector<1x256xi32>
    %227 = vector.shape_cast %226 : vector<1x256xi1> to vector<1x256xi1>
    %228 = vector.broadcast %227 : vector<1x256xi1> to vector<8x256xi1>
    %229 = arith.select %228, %221, %222 : vector<8x256xi1>, vector<8x256xf32>
    %230 = arith.addf %220, %229 : vector<8x256xf32>
    %c252_i32_79 = arith.constant 252 : i32
    %231 = tpu.dynamic_rotate %230 by %c252_i32_79 dim 1 : vector<8x256xf32>, i32 -> vector<8x256xf32>
    %c4_i32_80 = arith.constant 4 : i32
    %232 = tpu.dynamic_rotate %230 by %c4_i32_80 dim 1 : vector<8x256xf32>, i32 -> vector<8x256xf32>
    %c4_i32_81 = arith.constant 4 : i32
    %233 = vector.broadcast %c4_i32_81 : i32 to vector<1x256xi32>
    %234 = arith.andi %3, %233 : vector<1x256xi32>
    %c0_i32_82 = arith.constant 0 : i32
    %235 = vector.broadcast %c0_i32_82 : i32 to vector<1x256xi32>
    %236 = arith.cmpi eq, %234, %235 : vector<1x256xi32>
    %237 = vector.shape_cast %236 : vector<1x256xi1> to vector<1x256xi1>
    %238 = vector.broadcast %237 : vector<1x256xi1> to vector<8x256xi1>
    %239 = arith.select %238, %231, %232 : vector<8x256xi1>, vector<8x256xf32>
    %240 = arith.addf %230, %239 : vector<8x256xf32>
    %c248_i32_83 = arith.constant 248 : i32
    %241 = tpu.dynamic_rotate %240 by %c248_i32_83 dim 1 : vector<8x256xf32>, i32 -> vector<8x256xf32>
    %c8_i32_84 = arith.constant 8 : i32
    %242 = tpu.dynamic_rotate %240 by %c8_i32_84 dim 1 : vector<8x256xf32>, i32 -> vector<8x256xf32>
    %c8_i32_85 = arith.constant 8 : i32
    %243 = vector.broadcast %c8_i32_85 : i32 to vector<1x256xi32>
    %244 = arith.andi %3, %243 : vector<1x256xi32>
    %c0_i32_86 = arith.constant 0 : i32
    %245 = vector.broadcast %c0_i32_86 : i32 to vector<1x256xi32>
    %246 = arith.cmpi eq, %244, %245 : vector<1x256xi32>
    %247 = vector.shape_cast %246 : vector<1x256xi1> to vector<1x256xi1>
    %248 = vector.broadcast %247 : vector<1x256xi1> to vector<8x256xi1>
    %249 = arith.select %248, %241, %242 : vector<8x256xi1>, vector<8x256xf32>
    %250 = arith.addf %240, %249 : vector<8x256xf32>
    %cst_87 = arith.constant 0.000000e+00 : f32
    %251 = vector.broadcast %cst_87 : f32 to vector<8x256xf32>
    %252 = arith.addf %251, %250 : vector<8x256xf32>
    %253 = arith.mulf %209, %209 : vector<8x256xf32>
    %c255_i32_88 = arith.constant 255 : i32
    %254 = tpu.dynamic_rotate %253 by %c255_i32_88 dim 1 : vector<8x256xf32>, i32 -> vector<8x256xf32>
    %c1_i32_89 = arith.constant 1 : i32
    %255 = tpu.dynamic_rotate %253 by %c1_i32_89 dim 1 : vector<8x256xf32>, i32 -> vector<8x256xf32>
    %c1_i32_90 = arith.constant 1 : i32
    %256 = vector.broadcast %c1_i32_90 : i32 to vector<1x256xi32>
    %257 = arith.andi %3, %256 : vector<1x256xi32>
    %c0_i32_91 = arith.constant 0 : i32
    %258 = vector.broadcast %c0_i32_91 : i32 to vector<1x256xi32>
    %259 = arith.cmpi eq, %257, %258 : vector<1x256xi32>
    %260 = vector.shape_cast %259 : vector<1x256xi1> to vector<1x256xi1>
    %261 = vector.broadcast %260 : vector<1x256xi1> to vector<8x256xi1>
    %262 = arith.select %261, %254, %255 : vector<8x256xi1>, vector<8x256xf32>
    %263 = arith.addf %253, %262 : vector<8x256xf32>
    %c254_i32_92 = arith.constant 254 : i32
    %264 = tpu.dynamic_rotate %263 by %c254_i32_92 dim 1 : vector<8x256xf32>, i32 -> vector<8x256xf32>
    %c2_i32_93 = arith.constant 2 : i32
    %265 = tpu.dynamic_rotate %263 by %c2_i32_93 dim 1 : vector<8x256xf32>, i32 -> vector<8x256xf32>
    %c2_i32_94 = arith.constant 2 : i32
    %266 = vector.broadcast %c2_i32_94 : i32 to vector<1x256xi32>
    %267 = arith.andi %3, %266 : vector<1x256xi32>
    %c0_i32_95 = arith.constant 0 : i32
    %268 = vector.broadcast %c0_i32_95 : i32 to vector<1x256xi32>
    %269 = arith.cmpi eq, %267, %268 : vector<1x256xi32>
    %270 = vector.shape_cast %269 : vector<1x256xi1> to vector<1x256xi1>
    %271 = vector.broadcast %270 : vector<1x256xi1> to vector<8x256xi1>
    %272 = arith.select %271, %264, %265 : vector<8x256xi1>, vector<8x256xf32>
    %273 = arith.addf %263, %272 : vector<8x256xf32>
    %c252_i32_96 = arith.constant 252 : i32
    %274 = tpu.dynamic_rotate %273 by %c252_i32_96 dim 1 : vector<8x256xf32>, i32 -> vector<8x256xf32>
    %c4_i32_97 = arith.constant 4 : i32
    %275 = tpu.dynamic_rotate %273 by %c4_i32_97 dim 1 : vector<8x256xf32>, i32 -> vector<8x256xf32>
    %c4_i32_98 = arith.constant 4 : i32
    %276 = vector.broadcast %c4_i32_98 : i32 to vector<1x256xi32>
    %277 = arith.andi %3, %276 : vector<1x256xi32>
    %c0_i32_99 = arith.constant 0 : i32
    %278 = vector.broadcast %c0_i32_99 : i32 to vector<1x256xi32>
    %279 = arith.cmpi eq, %277, %278 : vector<1x256xi32>
    %280 = vector.shape_cast %279 : vector<1x256xi1> to vector<1x256xi1>
    %281 = vector.broadcast %280 : vector<1x256xi1> to vector<8x256xi1>
    %282 = arith.select %281, %274, %275 : vector<8x256xi1>, vector<8x256xf32>
    %283 = arith.addf %273, %282 : vector<8x256xf32>
    %c248_i32_100 = arith.constant 248 : i32
    %284 = tpu.dynamic_rotate %283 by %c248_i32_100 dim 1 : vector<8x256xf32>, i32 -> vector<8x256xf32>
    %c8_i32_101 = arith.constant 8 : i32
    %285 = tpu.dynamic_rotate %283 by %c8_i32_101 dim 1 : vector<8x256xf32>, i32 -> vector<8x256xf32>
    %c8_i32_102 = arith.constant 8 : i32
    %286 = vector.broadcast %c8_i32_102 : i32 to vector<1x256xi32>
    %287 = arith.andi %3, %286 : vector<1x256xi32>
    %c0_i32_103 = arith.constant 0 : i32
    %288 = vector.broadcast %c0_i32_103 : i32 to vector<1x256xi32>
    %289 = arith.cmpi eq, %287, %288 : vector<1x256xi32>
    %290 = vector.shape_cast %289 : vector<1x256xi1> to vector<1x256xi1>
    %291 = vector.broadcast %290 : vector<1x256xi1> to vector<8x256xi1>
    %292 = arith.select %291, %284, %285 : vector<8x256xi1>, vector<8x256xf32>
    %293 = arith.addf %283, %292 : vector<8x256xf32>
    %294 = arith.addf %252, %293 : vector<8x256xf32>
    %cst_104 = arith.constant 3.125000e-02 : f32
    %295 = vector.broadcast %cst_104 : f32 to vector<8x256xf32>
    %296 = arith.mulf %294, %295 : vector<8x256xf32>
    %cst_105 = arith.constant 9.99999974E-6 : f32
    %297 = vector.broadcast %cst_105 : f32 to vector<8x256xf32>
    %298 = arith.addf %296, %297 : vector<8x256xf32>
    %299 = math.rsqrt %298 : vector<8x256xf32>
    %300 = arith.mulf %208, %299 : vector<8x256xf32>
    %301 = arith.mulf %209, %299 : vector<8x256xf32>
    %cst_106 = arith.constant 0.000000e+00 : f32
    %302 = vector.broadcast %cst_106 : f32 to vector<8x256xf32>
    %303 = arith.maximumf %300, %302 : vector<8x256xf32>
    %cst_107 = arith.constant 0.000000e+00 : f32
    %304 = vector.broadcast %cst_107 : f32 to vector<8x256xf32>
    %305 = arith.maximumf %301, %304 : vector<8x256xf32>
    %c0_108 = arith.constant 0 : index
    %c0_109 = arith.constant 0 : index
    %306 = vector.load %arg4[%c0_108, %c0_109] : memref<48x8xf32, #tpu.memory_space<vmem>>, vector<48x8xf32>
    %cst_110 = arith.constant dense<0.000000e+00> : vector<48x256xf32>
    %307 = tpu.matmul %306, %303, %cst_110 {dimension_numbers = #tpu.dot_dimension_numbers<[1], [0], [0], [1], [0, 0, 1, 1], [], []>, precision = #tpu.contract_precision<fp32>} : vector<48x8xf32>, vector<8x256xf32>, vector<48x256xf32> -> vector<48x256xf32>
    %c0_111 = arith.constant 0 : index
    %c0_112 = arith.constant 0 : index
    %308 = vector.load %arg4[%c0_111, %c0_112] : memref<48x8xf32, #tpu.memory_space<vmem>>, vector<48x8xf32>
    %cst_113 = arith.constant dense<0.000000e+00> : vector<48x256xf32>
    %309 = tpu.matmul %308, %305, %cst_113 {dimension_numbers = #tpu.dot_dimension_numbers<[1], [0], [0], [1], [0, 0, 1, 1], [], []>, precision = #tpu.contract_precision<fp32>} : vector<48x8xf32>, vector<8x256xf32>, vector<48x256xf32> -> vector<48x256xf32>
    %310 = vector.extract_strided_slice %307 {offsets = [0, 0], sizes = [16, 256], strides = [1, 1]} : vector<48x256xf32> to vector<16x256xf32>
    %311 = vector.extract_strided_slice %307 {offsets = [16, 0], sizes = [16, 256], strides = [1, 1]} : vector<48x256xf32> to vector<16x256xf32>
    %312 = vector.extract_strided_slice %307 {offsets = [32, 0], sizes = [16, 256], strides = [1, 1]} : vector<48x256xf32> to vector<16x256xf32>
    %313 = vector.extract_strided_slice %309 {offsets = [0, 0], sizes = [16, 256], strides = [1, 1]} : vector<48x256xf32> to vector<16x256xf32>
    %314 = vector.extract_strided_slice %309 {offsets = [16, 0], sizes = [16, 256], strides = [1, 1]} : vector<48x256xf32> to vector<16x256xf32>
    %315 = vector.extract_strided_slice %309 {offsets = [32, 0], sizes = [16, 256], strides = [1, 1]} : vector<48x256xf32> to vector<16x256xf32>
    %c0_114 = arith.constant 0 : index
    %c0_115 = arith.constant 0 : index
    %316 = vector.load %arg5[%c0_114, %c0_115] : memref<16x1xf32, #tpu.memory_space<vmem>>, vector<16x1xf32>
    %c0_116 = arith.constant 0 : index
    %c0_117 = arith.constant 0 : index
    %317 = vector.load %arg6[%c0_116, %c0_117] : memref<16x1xf32, #tpu.memory_space<vmem>>, vector<16x1xf32>
    %318 = arith.addf %313, %311 : vector<16x256xf32>
    %c1_i32_118 = arith.constant 1 : i32
    %319 = tpu.dynamic_rotate %315 by %c1_i32_118 dim 1 : vector<16x256xf32>, i32 -> vector<16x256xf32>
    %320 = vector.broadcast %11 : vector<1x256xf32> to vector<16x256xf32>
    %321 = arith.mulf %319, %320 : vector<16x256xf32>
    %322 = arith.addf %318, %321 : vector<16x256xf32>
    %c255_i32_119 = arith.constant 255 : i32
    %323 = tpu.dynamic_rotate %310 by %c255_i32_119 dim 1 : vector<16x256xf32>, i32 -> vector<16x256xf32>
    %324 = vector.broadcast %7 : vector<1x256xf32> to vector<16x256xf32>
    %325 = arith.mulf %323, %324 : vector<16x256xf32>
    %326 = arith.addf %325, %314 : vector<16x256xf32>
    %327 = arith.addf %326, %312 : vector<16x256xf32>
    %328 = vector.broadcast %316 : vector<16x1xf32> to vector<16x256xf32>
    %329 = arith.addf %322, %328 : vector<16x256xf32>
    %330 = arith.addf %329, %114 : vector<16x256xf32>
    %331 = vector.broadcast %317 : vector<16x1xf32> to vector<16x256xf32>
    %332 = arith.addf %330, %331 : vector<16x256xf32>
    %c0_120 = arith.constant 0 : index
    %c0_121 = arith.constant 0 : index
    %333 = vector.load %arg7[%c0_120, %c0_121] : memref<16x256xf32, #tpu.memory_space<vmem>>, vector<16x256xf32>
    tpu.vector_store %arg7[%c0_120, %c0_121], %332 {strides = array<i32>} : memref<16x256xf32, #tpu.memory_space<vmem>>, vector<16x256xf32>,
    %334 = vector.broadcast %316 : vector<16x1xf32> to vector<16x256xf32>
    %335 = arith.addf %327, %334 : vector<16x256xf32>
    %336 = vector.broadcast %317 : vector<16x1xf32> to vector<16x256xf32>
    %337 = arith.addf %335, %336 : vector<16x256xf32>
    %c0_122 = arith.constant 0 : index
    %c0_123 = arith.constant 0 : index
    %338 = vector.load %arg8[%c0_122, %c0_123] : memref<16x256xf32, #tpu.memory_space<vmem>>, vector<16x256xf32>
    tpu.vector_store %arg8[%c0_122, %c0_123], %337 {strides = array<i32>} : memref<16x256xf32, #tpu.memory_space<vmem>>, vector<16x256xf32>,
    return
  }
  func.func @transform_0(%arg0: i32) -> (i32, i32) {
    %c0_i32 = arith.constant 0 : i32
    %c0_i32_0 = arith.constant 0 : i32
    return %c0_i32, %arg0 : i32, i32
  }
  func.func @transform_1(%arg0: i32) -> (i32, i32) {
    %c0_i32 = arith.constant 0 : i32
    %c0_i32_0 = arith.constant 0 : i32
    %c0_i32_1 = arith.constant 0 : i32
    return %c0_i32, %c0_i32_0 : i32, i32
  }
  func.func @transform_2(%arg0: i32) -> (i32, i32) {
    %c0_i32 = arith.constant 0 : i32
    %c0_i32_0 = arith.constant 0 : i32
    %c0_i32_1 = arith.constant 0 : i32
    return %c0_i32, %c0_i32_0 : i32, i32
  }
  func.func @transform_3(%arg0: i32) -> (i32, i32) {
    %c0_i32 = arith.constant 0 : i32
    %c0_i32_0 = arith.constant 0 : i32
    %c0_i32_1 = arith.constant 0 : i32
    return %c0_i32, %c0_i32_0 : i32, i32
  }
  func.func @transform_4(%arg0: i32) -> (i32, i32) {
    %c0_i32 = arith.constant 0 : i32
    %c0_i32_0 = arith.constant 0 : i32
    %c0_i32_1 = arith.constant 0 : i32
    return %c0_i32, %c0_i32_0 : i32, i32
  }
  func.func @transform_5(%arg0: i32) -> (i32, i32) {
    %c0_i32 = arith.constant 0 : i32
    %c0_i32_0 = arith.constant 0 : i32
    %c0_i32_1 = arith.constant 0 : i32
    return %c0_i32, %c0_i32_0 : i32, i32
  }
  func.func @transform_6(%arg0: i32) -> (i32, i32) {
    %c0_i32 = arith.constant 0 : i32
    %c0_i32_0 = arith.constant 0 : i32
    return %c0_i32, %arg0 : i32, i32
  }
  func.func @transform_7(%arg0: i32) -> (i32, i32) {
    %c0_i32 = arith.constant 0 : i32
    %c0_i32_0 = arith.constant 0 : i32
    return %c0_i32, %arg0 : i32, i32
  }
}

</mosaic_0001>

<bundles_post_ra>
// kernel: preact_trans_resnet_block.1
= control target key start
LH: loop header
LB: loop body
LE: loop exit
PB: predicated region body
PF: predicated region fallthrough
CT: control target
= control target key end

     0   :  { %s2994_s26 = smov 1   ;;  %s2995_s27 = smov 127   ;;  %v27_v2 = vlaneseq  ;;  %s4083_s0 = inlined_call_operand.vmem [shape: f32[8,256], index: 0, kind: input, shape index: {}]   ;;  %s4084_s1 = inlined_call_operand.vmem [shape: f32[40,8], index: 1, kind: input, shape index: {}]   ;;  %s4085_s2 = inlined_call_operand.vmem [shape: f32[8,1], index: 2, kind: input, shape index: {}]   ;;  %s4086_s4 = inlined_call_operand.vmem [shape: f32[16,1], index: 4, kind: input, shape index: {}]   ;;  %s4087_s3 = inlined_call_operand.vmem [shape: f32[48,8], index: 3, kind: input, shape index: {}]   ;;  %s4088_s5 = inlined_call_operand.vmem [shape: f32[16,1], index: 5, kind: input, shape index: {}]   ;;  %s4089_s6 = inlined_call_operand.vmem [shape: f32[16,256], index: 6, kind: output, shape index: {0}]   ;;  %s4090_s7 = inlined_call_operand.vmem [shape: f32[16,256], index: 7, kind: output, shape index: {1}]  }
   0x1   :  { %v3047_v0 = vld [vmem:[%s4083_s0] sm:$0xff]  ;;  %v3056_v1 = vld [vmem:[%s4083_s0 + $0x8] sm:$0xff]  ;;  %s2996_s0 = smov 126   ;;  %s2997_s30 = smov 2  }
   0x2   :  { %51 = vrot.lane.b32.xlu1 %v3047_v0, %s2994_s26  ;;  %44 = vrot.lane.b32.xlu0 %v3047_v0, %s2995_s27  ;;  %v3062_v3 = vand.u32 127, %v27_v2  ;;  %s2998_s8 = smov 124   ;;  %s2999_s9 = smov 4   ;;  %v1223_v59 = vld [vmem:[%s4087_s3 + $0x8] sm:$0xff] }
   0x3   :  { %s3000_s10 = smov 120   ;;  %s3001_s11 = smov 8  }
   0x4   :  { %v29_v4 = vadd.s32 128, %v3062_v3  ;;  %v3068_v6 = vand.u32 15, %v3062_v3  ;;  %vm55_vm0 = vcmp.lt.s32.totalorder %v3062_v3, 1  ;;  %vm48_vm1 = vcmp.lt.s32.totalorder %v3062_v3, 127 }
   0x5   :  { %vm74_vm4 = vcmp.lt.s32.totalorder %v3062_v3, 126  ;;  %vm4095_vm5 = vcmp.lt.s32.totalorder %v3062_v3, 2  ;;  %vm4094_vm8 = vcmp.lt.s32.totalorder %v3062_v3, 124  ;;  %vm4091_vm9 = vcmp.lt.s32.totalorder %v3062_v3, 4 }
   0x6   :  { %53 = vrot.lane.b32.xlu1 %v3056_v1, %s2994_s26  ;;  %46 = vrot.lane.b32.xlu0 %v3056_v1, %s2995_s27  ;;  %v3065_v5 = vand.u32 15, %v29_v4  ;;  %v58_v8 = vand.u32 1, %v3068_v6  ;;  %v84_v23 = vand.u32 2, %v3068_v6  ;;  %v110_v39 = vand.u32 4, %v3068_v6 }
   0x7   :  { %v136_v55 = vand.u32 8, %v3068_v6  ;;  %vm4093_vm12 = vcmp.lt.s32.totalorder %v3062_v3, 120  ;;  %vm133_vm13 = vcmp.lt.s32.totalorder %v3062_v3, 8 }
   0x8   :  { %v59_v7 = vand.u32 1, %v3065_v5  ;;  %vm3078_vm3 = vcmp.eq.s32.totalorder %v58_v8, 0  ;;  %v85_v24 = vand.u32 2, %v3065_v5  ;;  %vm3104_vm6 = vcmp.eq.s32.totalorder %v84_v23, 0 }
   0x9   :  { %v111_v40 = vand.u32 4, %v3065_v5  ;;  %vm3132_vm10 = vcmp.eq.s32.totalorder %v110_v39, 0  ;;  %v137_v56 = vand.u32 8, %v3065_v5  ;;  %vm3160_vm14 = vcmp.eq.s32.totalorder %v136_v55, 0 }
   0xa   :  { %vm3074_vm2 = vcmp.eq.s32.totalorder %v59_v7, 0  ;;  %vm3108_vm7 = vcmp.eq.s32.totalorder %v85_v24, 0 }
   0xb   :  { %vm3136_vm11 = vcmp.eq.s32.totalorder %v111_v40, 0  ;;  %vm3164_vm15 = vcmp.eq.s32.totalorder %v137_v56, 0 }
  0x74   :  { %v52_v9 = vpop.permute.xlu1 %51  ;;  %v45_v10 = vpop.permute.xlu0 %44 }
  0x78   :  { %v54_v13 = vpop.permute.xlu1 %53  ;;  %v47_v14 = vpop.permute.xlu0 %46 }
  0x79   :  { %v56_v15 = vsel %vm55_vm0, %v52_v9, %v54_v13  ;;  %v57_v16 = vsel %vm55_vm0, %v54_v13, %v52_v9  ;;  %v49_v17 = vsel %vm48_vm1, %v45_v10, %v47_v14  ;;  %v50_v18 = vsel %vm48_vm1, %v47_v14, %v45_v10 }
  0x7a   :  { %v67_v19 = vsel %vm3074_vm2, %v50_v18, %v56_v15  ;;  %v66_v20 = vsel %vm3078_vm3, %v49_v17, %v57_v16 }
  0x7b   :  { %v69_v21 = vadd.f32 %v67_v19, %v3056_v1  ;;  %v68_v22 = vadd.f32 %v66_v20, %v3047_v0 }
  0x7d   :  { %72 = vrot.lane.b32.xlu1 %v69_v21, %s2996_s0  ;;  %70 = vrot.lane.b32.xlu0 %v68_v22, %s2996_s0 }
  0x81   :  { %79 = vrot.lane.b32.xlu1 %v69_v21, %s2997_s30  ;;  %77 = vrot.lane.b32.xlu0 %v68_v22, %s2997_s30 }
  0xef   :  { %v73_v25 = vpop.permute.xlu1 %72  ;;  %v71_v26 = vpop.permute.xlu0 %70 }
  0xf0   :  { %v75_v31 = vsel %vm74_vm4, %v71_v26, %v73_v25  ;;  %v76_v32 = vsel %vm74_vm4, %v73_v25, %v71_v26 }
  0xf3   :  { %v80_v29 = vpop.permute.xlu1 %79  ;;  %v78_v30 = vpop.permute.xlu0 %77 }
  0xf4   :  { %v82_v33 = vsel %vm4095_vm5, %v78_v30, %v80_v29  ;;  %v83_v34 = vsel %vm4095_vm5, %v80_v29, %v78_v30 }
  0xf5   :  { %v92_v35 = vsel %vm3104_vm6, %v75_v31, %v83_v34  ;;  %v93_v36 = vsel %vm3108_vm7, %v76_v32, %v82_v33 }
  0xf6   :  { %v94_v37 = vadd.f32 %v92_v35, %v68_v22  ;;  %v95_v38 = vadd.f32 %v93_v36, %v69_v21 }
  0xf8   :  { %96 = vrot.lane.b32.xlu0 %v94_v37, %s2998_s8  ;;  %98 = vrot.lane.b32.xlu1 %v95_v38, %s2998_s8 }
  0xfc   :  { %103 = vrot.lane.b32.xlu0 %v94_v37, %s2999_s9  ;;  %105 = vrot.lane.b32.xlu1 %v95_v38, %s2999_s9 }
 0x16a   :  { %v97_v41 = vpop.permute.xlu0 %96  ;;  %v99_v42 = vpop.permute.xlu1 %98 }
 0x16b   :  { %v101_v47 = vsel %vm4094_vm8, %v97_v41, %v99_v42  ;;  %v102_v48 = vsel %vm4094_vm8, %v99_v42, %v97_v41 }
 0x16e   :  { %v104_v45 = vpop.permute.xlu0 %103  ;;  %v106_v46 = vpop.permute.xlu1 %105 }
 0x16f   :  { %v108_v49 = vsel %vm4091_vm9, %v104_v45, %v106_v46  ;;  %v109_v50 = vsel %vm4091_vm9, %v106_v46, %v104_v45 }
 0x170   :  { %v118_v51 = vsel %vm3132_vm10, %v101_v47, %v109_v50  ;;  %v119_v52 = vsel %vm3136_vm11, %v102_v48, %v108_v49 }
 0x171   :  { %v120_v53 = vadd.f32 %v118_v51, %v94_v37  ;;  %v121_v54 = vadd.f32 %v119_v52, %v95_v38 }
 0x173   :  { %122 = vrot.lane.b32.xlu0 %v120_v53, %s3000_s10  ;;  %124 = vrot.lane.b32.xlu1 %v121_v54, %s3000_s10 }
 0x177   :  { %129 = vrot.lane.b32.xlu0 %v120_v53, %s3001_s11  ;;  %131 = vrot.lane.b32.xlu1 %v121_v54, %s3001_s11 }
 0x1e5   :  { %v123_v57 = vpop.permute.xlu0 %122  ;;  %v125_v58 = vpop.permute.xlu1 %124 }
 0x1e6   :  { %v127_v63 = vsel %vm4093_vm12, %v123_v57, %v125_v58  ;;  %v128_v2 = vsel %vm4093_vm12, %v125_v58, %v123_v57  ;;  %v3002_v58 = vmov 0.0  }
 0x1e7   :  { %319 = vmatprep.mubr.f32.mxu0 %v3002_v58  ;;  %341 = vmatprep.mubr.f32.mxu1 %v3002_v58 }
 0x1e9   :  { %v130_v61 = vpop.permute.xlu0 %129  ;;  %v132_v62 = vpop.permute.xlu1 %131 }
 0x1ea   :  { %v134_v4 = vsel %vm133_vm13, %v130_v61, %v132_v62  ;;  %v135_v7 = vsel %vm133_vm13, %v132_v62, %v130_v61 }
 0x1eb   :  { %v144_v8 = vsel %vm3160_vm14, %v127_v63, %v135_v7  ;;  %v145_v9 = vsel %vm3164_vm15, %v128_v2, %v134_v4 }
 0x1ec   :  { %v146_v10 = vadd.f32 %v144_v8, %v120_v53  ;;  %v147_v13 = vadd.f32 %v145_v9, %v121_v54 }
 0x1ee   :  { %v150_v14 = vmul.f32 0.0625, %v146_v10  ;;  %v151_v15 = vmul.f32 0.0625, %v147_v13 }
 0x1f0   :  { %v3181_v16 = vsub.f32 %v3047_v0, %v150_v14  ;;  %v3184_v17 = vsub.f32 %v3056_v1, %v151_v15  ;;  %v232_v14 = vld [vmem:[%s4084_s1] sm:$0xff] }
 0x1f2   :  { %v154_v18 = vmul.f32 %v3181_v16, %v3181_v16  ;;  %v155_v19 = vmul.f32 %v3184_v17, %v3184_v17 }
 0x1f4   :  { %156 = vrot.lane.b32.xlu0 %v154_v18, %s2995_s27  ;;  %158 = vrot.lane.b32.xlu1 %v155_v19, %s2995_s27 }
 0x1f8   :  { %162 = vrot.lane.b32.xlu0 %v154_v18, %s2994_s26  ;;  %164 = vrot.lane.b32.xlu1 %v155_v19, %s2994_s26 }
 0x266   :  { %v157_v20 = vpop.permute.xlu0 %156  ;;  %v159_v0 = vpop.permute.xlu1 %158 }
 0x267   :  { %v160_v1 = vsel %vm48_vm1, %v157_v20, %v159_v0  ;;  %v161_v23 = vsel %vm48_vm1, %v159_v0, %v157_v20 }
 0x26a   :  { %v163_v21 = vpop.permute.xlu0 %162  ;;  %v165_v22 = vpop.permute.xlu1 %164 }
 0x26b   :  { %v166_v24 = vsel %vm55_vm0, %v163_v21, %v165_v22  ;;  %v167_v25 = vsel %vm55_vm0, %v165_v22, %v163_v21  ;;  %v233_v21 = vld [vmem:[%s4084_s1 + $0x8] sm:$0xff]  ;;  %v3003_v22 = vmov 0  }
 0x26c   :  { %v168_v26 = vsel %vm3078_vm3, %v160_v1, %v167_v25  ;;  %v169_v29 = vsel %vm3074_vm2, %v161_v23, %v166_v24  ;;  %2984 = vset.pattern.permute.xlu0 %v3003_v22  ;;  %v914_v1 = vld [vmem:[%s4085_s2] sm:$0xff]  ;;  %2985 = vset.pattern.permute.xlu1 %v3003_v22 }
 0x26d   :  { %v170_v30 = vadd.f32 %v168_v26, %v154_v18  ;;  %v171_v31 = vadd.f32 %v169_v29, %v155_v19  ;;  %v234_v29 = vld [vmem:[%s4084_s1 + $0x10] sm:$0xff] }
 0x26f   :  { %172 = vrot.lane.b32.xlu0 %v170_v30, %s2996_s0  ;;  %174 = vrot.lane.b32.xlu1 %v171_v31, %s2996_s0 }
 0x273   :  { %178 = vrot.lane.b32.xlu0 %v170_v30, %s2997_s30  ;;  %180 = vrot.lane.b32.xlu1 %v171_v31, %s2997_s30 }
 0x2e1   :  { %v173_v32 = vpop.permute.xlu0 %172  ;;  %v175_v33 = vpop.permute.xlu1 %174 }
 0x2e2   :  { %v176_v36 = vsel %vm74_vm4, %v173_v32, %v175_v33  ;;  %v177_v37 = vsel %vm74_vm4, %v175_v33, %v173_v32  ;;  %v235_v33 = vld [vmem:[%s4084_s1 + $0x18] sm:$0xff] }
 0x2e5   :  { %v179_v34 = vpop.permute.xlu0 %178  ;;  %v181_v35 = vpop.permute.xlu1 %180 }
 0x2e6   :  { %v182_v38 = vsel %vm4095_vm5, %v179_v34, %v181_v35  ;;  %v183_v39 = vsel %vm4095_vm5, %v181_v35, %v179_v34 }
 0x2e7   :  { %v184_v40 = vsel %vm3104_vm6, %v176_v36, %v183_v39  ;;  %v185_v41 = vsel %vm3108_vm7, %v177_v37, %v182_v38 }
 0x2e8   :  { %v186_v42 = vadd.f32 %v184_v40, %v170_v30  ;;  %v187_v45 = vadd.f32 %v185_v41, %v171_v31  ;;  %v236_v41 = vld [vmem:[%s4084_s1 + $0x20] sm:$0xff] }
 0x2ea   :  { %188 = vrot.lane.b32.xlu0 %v186_v42, %s2998_s8  ;;  %190 = vrot.lane.b32.xlu1 %v187_v45, %s2998_s8 }
 0x2ee   :  { %194 = vrot.lane.b32.xlu0 %v186_v42, %s2999_s9  ;;  %196 = vrot.lane.b32.xlu1 %v187_v45, %s2999_s9 }
 0x35c   :  { %v189_v46 = vpop.permute.xlu0 %188  ;;  %v191_v47 = vpop.permute.xlu1 %190 }
 0x35d   :  { %v192_v50 = vsel %vm4094_vm8, %v189_v46, %v191_v47  ;;  %v193_v51 = vsel %vm4094_vm8, %v191_v47, %v189_v46 }
 0x360   :  { %v195_v48 = vpop.permute.xlu0 %194  ;;  %v197_v49 = vpop.permute.xlu1 %196 }
 0x361   :  { %v198_v52 = vsel %vm4091_vm9, %v195_v48, %v197_v49  ;;  %v199_v53 = vsel %vm4091_vm9, %v197_v49, %v195_v48  ;;  %vm4092_vm9 = vcmask 64512  }
 0x362   :  { %v200_v54 = vsel %vm3132_vm10, %v192_v50, %v199_v53  ;;  %v201_v55 = vsel %vm3136_vm11, %v193_v51, %v198_v52  ;;  %v239_v0 = vsel %vm4092_vm9, %v232_v14, 0  ;;  %v242_v26 = vsel %vm4092_vm9, %v233_v21, 0 }
 0x363   :  { %v202_v56 = vadd.f32 %v200_v54, %v186_v42  ;;  %v203_v57 = vadd.f32 %v201_v55, %v187_v45  ;;  %v3266_v25 = vand.u32 4294901760, %v239_v0  ;;  %v3275_v31 = vand.u32 4294901760, %v242_v26 }
 0x364   :  { %v245_v32 = vsel %vm4092_vm9, %v234_v29, 0  ;;  %v248_v37 = vsel %vm4092_vm9, %v235_v33, 0  ;;  %v251_v53 = vsel %vm4092_vm9, %v236_v41, 0  ;;  %vm32_vm9 = vcmp.ne.s32.totalorder %v3068_v6, 15 }
 0x365   :  { %204 = vrot.lane.b32.xlu0 %v202_v56, %s3000_s10  ;;  %206 = vrot.lane.b32.xlu1 %v203_v57, %s3000_s10  ;;  %v3273_v30 = vsub.f32 %v239_v0, %v3266_v25  ;;  %v3281_v34 = vand.u32 4294901760, %v245_v32  ;;  %v3285_v36 = vsub.f32 %v242_v26, %v3275_v31  ;;  %v3291_v40 = vand.u32 4294901760, %v248_v37 }
 0x367   :  { %v322_v35 = vand.u32 4294901760, %v3273_v30  ;;  %v3289_v38 = vsub.f32 %v245_v32, %v3281_v34  ;;  %v333_v48 = vand.u32 4294901760, %v3285_v36  ;;  %v3304_v50 = vsub.f32 %v248_v37, %v3291_v40 }
 0x369   :  { %210 = vrot.lane.b32.xlu0 %v202_v56, %s3001_s11  ;;  %212 = vrot.lane.b32.xlu1 %v203_v57, %s3001_s11  ;;  %v344_v42 = vand.u32 4294901760, %v3289_v38  ;;  %v323_v47 = vsub.f32 %v3273_v30, %v322_v35 }
 0x36b   :  { %v345_v51 = vsub.f32 %v3289_v38, %v344_v42 }
 0x36d   :  { %917 = vperm.xlu0 %2984, %v914_v1  }
 0x3d7   :  { %v205_v61 = vpop.permute.xlu0 %204  ;;  %v207_v62 = vpop.permute.xlu1 %206 }
 0x3d8   :  { %v208_v4 = vsel %vm4093_vm12, %v205_v61, %v207_v62  ;;  %v209_v7 = vsel %vm4093_vm12, %v207_v62, %v205_v61  ;;  %v3316_v61 = vand.u32 4294901760, %v251_v53  ;;  %v346_v62 = vand.u32 4294901760, %v345_v51 }
 0x3d9   :  { %vm33_vm12 = vcmp.ne.s32.totalorder %v3065_v5, 15  ;;  %v3409_v51 = vsel %vm32_vm9, 1.0, %v3002_v58  ;;  %vm4112_vm9 = vcmp.lt.s32.totalorder %v3062_v3, 4 }
 0x3db   :  { %v211_v63 = vpop.permute.xlu0 %210  ;;  %v213_v2 = vpop.permute.xlu1 %212 }
 0x3dc   :  { %v214_v8 = vsel %vm133_vm13, %v211_v63, %v213_v2  ;;  %v215_v9 = vsel %vm133_vm13, %v213_v2, %v211_v63 }
 0x3dd   :  { %v216_v10 = vsel %vm3160_vm14, %v208_v4, %v215_v9  ;;  %v217_v13 = vsel %vm3164_vm15, %v209_v7, %v214_v8  ;;  %v365_v7 = vsub.f32 %v251_v53, %v3316_v61 }
 0x3de   :  { %v218_v15 = vadd.f32 %v216_v10, %v202_v56  ;;  %v219_v18 = vadd.f32 %v217_v13, %v203_v57  ;;  %v324_v56 = vand.u32 4294901760, %v323_v47 }
 0x3df   :  { %v366_v13 = vand.u32 4294901760, %v365_v7 }
 0x3e0   :  { %v222_v19 = vmul.f32 0.0625, %v218_v15  ;;  %v223_v20 = vmul.f32 0.0625, %v219_v18 }
 0x3e2   :  { %v224_v23 = vadd.f32 1e-05, %v222_v19  ;;  %v225_v24 = vadd.f32 1e-05, %v223_v20  ;;  %v367_v19 = vsub.f32 %v365_v7, %v366_v13 }
 0x3e4   :  { %2986 = vrsqrt.f32 %v224_v23  ;;  %v368_v21 = vand.u32 4294901760, %v367_v19 }
 0x3e5   :  { %2988 = vrsqrt.f32 %v225_v24 }
 0x3ee   :  { %v2987_v39 = vpop.eup %2986 }
 0x3ef   :  { %v2989_v45 = vpop.eup %2988  ;;  %v228_v46 = vmul.f32 %v2987_v39, %v3181_v16  ;;  %v355_v16 = vand.u32 4294901760, %v3304_v50 }
 0x3f0   :  { %v229_v49 = vmul.f32 %v2989_v45, %v3184_v17  ;;  %v334_v17 = vsub.f32 %v3285_v36, %v333_v48 }
 0x3f1   :  { %v230_v52 = vmax.f32 %v228_v46, 0.0  ;;  %v356_v63 = vsub.f32 %v3304_v50, %v355_v16 }
 0x3f2   :  { %v231_v54 = vmax.f32 %v229_v49, 0.0  ;;  %v335_v9 = vand.u32 4294901760, %v334_v17 }
 0x3f3   :  { %v3311_v55 = vand.u32 4294901760, %v230_v52  ;;  %v357_v14 = vand.u32 4294901760, %v356_v63 }
 0x3f4   :  { %v253_v57 = vand.u32 4294901760, %v231_v54 }
 0x3f5   :  { %v382_v2 = vsub.f32 %v230_v52, %v3311_v55  ;;  %v3412_v52 = vsel %vm33_vm12, 1.0, %v3002_v58  ;;  %vm4113_vm12 = vmmov %vm4112_vm9 }
 0x3f6   :  { %254 = vmatprep.subr.mxu0 %v253_v57  ;;  %2778 = vmatprep.subr.mxu1 %v253_v57  ;;  %v376_v4 = vsub.f32 %v231_v54, %v253_v57 }
 0x3f7   :  { %256 = vmatpush1.msra.mxu0 %v3311_v55  ;;  %2779 = vmatpush1.msra.mxu1 %v3311_v55  ;;  %v383_v8 = vand.u32 4294901760, %v382_v2 }
 0x3f8   :  { %325 = vmatmul.mubr.f32.vlgmr.msra.gmra.mrb[0].mxu0 %v324_v56  ;;  %v377_v10 = vand.u32 4294901760, %v376_v4  ;;  %347 = vmatmul.mubr.f32.vlgmr.msra.gmra.mrb[0].mxu1 %v346_v62 }
 0x3f9   :  { %330 = vmatprep.mubr.f32.mxu0 %v3002_v58  ;;  %v384_v15 = vsub.f32 %v382_v2, %v383_v8  ;;  %352 = vmatprep.mubr.f32.mxu1 %v3002_v58 }
 0x3fa   :  { %v378_v18 = vsub.f32 %v376_v4, %v377_v10 }
 0x3fb   :  { %v385_v20 = vand.u32 4294901760, %v384_v15 }
 0x3fc   :  { %336 = vmatmul.mubr.f32.gmra.mrb[2].mxu0 %v335_v9  ;;  %v379_v0 = vand.u32 4294901760, %v378_v18  ;;  %358 = vmatmul.mubr.f32.gmra.mrb[2].mxu1 %v357_v14 }
 0x3fd   :  { %449 = vmatprep.mubr.f32.mxu0 %v3002_v58  ;;  %363 = vmatprep.mubr.f32.mxu1 %v3002_v58 }
 0x3fe   :  { %380 = vmatprep.subr.mxu0 %v379_v0 }
 0x3ff   :  { %386 = vmatpush1.msra.mxu0 %v385_v20 }
 0x400   :  { %451 = vmatmul.mubr.f32.vlgmr.msra.gmra.mrb[0].mxu0 %v3266_v25  ;;  %487 = vmatprep.subr.mxu0 %v376_v4 }
 0x401   :  { %490 = vmatpush1.msra.mxu0 %v382_v2  ;;  %456 = vmatprep.mubr.f32.mxu0 %v3002_v58 }
 0x402   :  { %595 = vmatprep.subr.mxu0 %v253_v57  ;;  %369 = vmatmul.mubr.f32.gmra.mrb[4].mxu1 %v368_v21 }
 0x403   :  { %1312 = vmatprep.mubr.f32.mxu1 %v3002_v58 }
 0x404   :  { %458 = vmatmul.mubr.f32.gmra.mrb[2].mxu0 %v3275_v31 }
 0x405   :  { %463 = vmatprep.mubr.f32.mxu0 %v3002_v58 }
 0x408   :  { %465 = vmatmul.mubr.f32.gmra.mrb[4].mxu0 %v3281_v34 }
 0x409   :  { %470 = vmatprep.mubr.f32.mxu0 %v3002_v58 }
 0x40c   :  { %472 = vmatmul.mubr.f32.gmra.mrb[6].mxu0 %v3291_v40 }
 0x40d   :  { %477 = vmatprep.mubr.f32.mxu0 %v3002_v58 }
 0x410   :  { %479 = vmatmul.mubr.f32.gmra.mrb[8].mxu0 %v3316_v61 }
 0x411   :  { %553 = vmatprep.mubr.f32.mxu0 %v3002_v58 }
 0x414   :  { %556 = vmatmul.mubr.f32.vlgmr.msra.gmra.mrb[0].mxu0 %v3273_v30 }
 0x415   :  { %597 = vmatpush1.msra.mxu0 %v3311_v55  ;;  %561 = vmatprep.mubr.f32.mxu0 %v3002_v58 }
 0x416   :  { %709 = vmatprep.subr.mxu0 %v377_v10 }
 0x418   :  { %564 = vmatmul.mubr.f32.gmra.mrb[2].mxu0 %v3285_v36 }
 0x419   :  { %569 = vmatprep.mubr.f32.mxu0 %v3002_v58 }
 0x41c   :  { %572 = vmatmul.mubr.f32.gmra.mrb[4].mxu0 %v3289_v38 }
 0x41d   :  { %577 = vmatprep.mubr.f32.mxu0 %v3002_v58 }
 0x420   :  { %580 = vmatmul.mubr.f32.gmra.mrb[6].mxu0 %v3304_v50 }
 0x421   :  { %585 = vmatprep.mubr.f32.mxu0 %v3002_v58 }
 0x424   :  { %588 = vmatmul.mubr.f32.gmra.mrb[8].mxu0 %v365_v7 }
 0x425   :  { %660 = vmatprep.mubr.f32.mxu0 %v3002_v58 }
 0x428   :  { %664 = vmatmul.mubr.f32.vlgmr.msra.gmra.mrb[0].mxu0 %v322_v35 }
 0x429   :  { %713 = vmatpush1.msra.mxu0 %v383_v8  ;;  %669 = vmatprep.mubr.f32.mxu0 %v3002_v58 }
 0x42a   :  { %813 = vmatprep.subr.mxu0 %v253_v57 }
 0x42c   :  { %673 = vmatmul.mubr.f32.gmra.mrb[2].mxu0 %v333_v48 }
 0x42d   :  { %678 = vmatprep.mubr.f32.mxu0 %v3002_v58 }
 0x430   :  { %682 = vmatmul.mubr.f32.gmra.mrb[4].mxu0 %v344_v42 }
 0x431   :  { %687 = vmatprep.mubr.f32.mxu0 %v3002_v58 }
 0x434   :  { %691 = vmatmul.mubr.f32.gmra.mrb[6].mxu0 %v355_v16 }
 0x435   :  { %696 = vmatprep.mubr.f32.mxu0 %v3002_v58 }
 0x438   :  { %700 = vmatmul.mubr.f32.gmra.mrb[8].mxu0 %v366_v13 }
 0x439   :  { %776 = vmatprep.mubr.f32.mxu0 %v3002_v58 }
 0x43c   :  { %778 = vmatmul.mubr.f32.vlgmr.msra.gmra.mrb[0].mxu0 %v3266_v25 }
 0x43d   :  { %815 = vmatpush1.msra.mxu0 %v3311_v55  ;;  %783 = vmatprep.mubr.f32.mxu0 %v3002_v58 }
 0x440   :  { %785 = vmatmul.mubr.f32.gmra.mrb[2].mxu0 %v3275_v31 }
 0x441   :  { %790 = vmatprep.mubr.f32.mxu0 %v3002_v58 }
 0x444   :  { %792 = vmatmul.mubr.f32.gmra.mrb[4].mxu0 %v3281_v34 }
 0x445   :  { %797 = vmatprep.mubr.f32.mxu0 %v3002_v58 }
 0x448   :  { %799 = vmatmul.mubr.f32.gmra.mrb[6].mxu0 %v3291_v40 }
 0x449   :  { %804 = vmatprep.mubr.f32.mxu0 %v3002_v58 }
 0x44c   :  { %806 = vmatmul.mubr.f32.gmra.mrb[8].mxu0 %v3316_v61 }
 0x44d   :  { %878 = vmatprep.mubr.f32.mxu0 %v3002_v58 }
 0x450   :  { %880 = vmatmul.mubr.f32.vlgmr.msra.gmra.mrb[0].mxu0 %v3266_v25 }
 0x451   :  { %885 = vmatprep.mubr.f32.mxu0 %v3002_v58 }
 0x454   :  { %887 = vmatmul.mubr.f32.gmra.mrb[2].mxu0 %v3275_v31  ;;  %v918_v31 = vpop.permute.xlu0 %917 }
 0x455   :  { %892 = vmatprep.mubr.f32.mxu0 %v3002_v58 }
 0x458   :  { %894 = vmatmul.mubr.f32.gmra.mrb[4].mxu0 %v3281_v34 }
 0x459   :  { %899 = vmatprep.mubr.f32.mxu0 %v3002_v58 }
 0x45c   :  { %901 = vmatmul.mubr.f32.gmra.mrb[6].mxu0 %v3291_v40 }
 0x45d   :  { %906 = vmatprep.mubr.f32.mxu0 %v3002_v58 }
 0x460   :  { %908 = vmatmul.mubr.f32.gmra.mrb[8].mxu0 %v3316_v61 }
 0x461   :  { %2274 = vmatprep.mubr.f32.mxu0 %v3002_v58 }
 0x4cb   :  { %v348_v22 = vpop.f32.mrb[0].mxu1 }
 0x4cc   :  { %v350_v1 = vpop.f32.mrb[1].mxu1 }
 0x4cf   :  { %v359_v23 = vpop.f32.mrb[2].mxu1 }
 0x4d0   :  { %v361_v24 = vpop.f32.mrb[3].mxu1 }
 0x4d5   :  { %v370_v25 = vpop.f32.mrb[4].mxu1 }
 0x4d6   :  { %v372_v26 = vpop.f32.mrb[5].mxu1 }
 0x523   :  { %v881_v29 = vpop.f32.mrb[0].mxu0 }
 0x524   :  { %922 = vrot.lane.b32.xlu1 %v881_v29, %s2995_s27  ;;  %v883_v30 = vpop.f32.mrb[1].mxu0 }
 0x527   :  { %v888_v32 = vpop.f32.mrb[2].mxu0 }
 0x528   :  { %v3385_v33 = vadd.f32 %v918_v31, %v888_v32  ;;  %924 = vrot.lane.b32.xlu1 %v883_v30, %s2995_s27  ;;  %v890_v34 = vpop.f32.mrb[3].mxu0 }
 0x529   :  { %v3388_v35 = vadd.f32 %v918_v31, %v890_v34 }
 0x52a   :  { %934 = vrot.lane.b32.xlu0 %v3385_v33, %s2995_s27 }
 0x52b   :  { %v895_v36 = vpop.f32.mrb[4].mxu0 }
 0x52c   :  { %v2780_v37 = vadd.f32 %v895_v36, %v348_v22  ;;  %936 = vrot.lane.b32.xlu1 %v3388_v35, %s2995_s27  ;;  %v897_v38 = vpop.f32.mrb[5].mxu0 }
 0x52d   :  { %v2781_v39 = vadd.f32 %v897_v38, %v350_v1 }
 0x52e   :  { %940 = vrot.lane.b32.xlu0 %v3385_v33, %s2994_s26 }
 0x52f   :  { %v902_v40 = vpop.f32.mrb[6].mxu0 }
 0x530   :  { %v3396_v41 = vadd.f32 %v902_v40, %v359_v23  ;;  %942 = vrot.lane.b32.xlu1 %v3388_v35, %s2994_s26  ;;  %v904_v42 = vpop.f32.mrb[7].mxu0 }
 0x531   :  { %v3400_v45 = vadd.f32 %v904_v42, %v361_v24 }
 0x533   :  { %v909_v46 = vpop.f32.mrb[8].mxu0 }
 0x534   :  { %v3402_v47 = vadd.f32 %v909_v46, %v370_v25  ;;  %v911_v48 = vpop.f32.mrb[9].mxu0 }
 0x535   :  { %v3404_v49 = vadd.f32 %v911_v48, %v372_v26 }
 0x596   :  { %v923_v50 = vpop.permute.xlu1 %922 }
 0x59a   :  { %v925_v53 = vpop.permute.xlu1 %924 }
 0x59b   :  { %v926_v54 = vsel %vm48_vm1, %v923_v50, %v925_v53  ;;  %v927_v16 = vsel %vm48_vm1, %v925_v53, %v923_v50 }
 0x59c   :  { %v928_v55 = vmul.f32 %v3409_v51, %v926_v54  ;;  %v929_v56 = vmul.f32 %v3412_v52, %v927_v16  ;;  %v935_v17 = vpop.permute.xlu0 %934 }
 0x59e   :  { %v930_v57 = vadd.f32 %v2780_v37, %v928_v55  ;;  %v931_v61 = vadd.f32 %v2781_v39, %v929_v56  ;;  %v937_v62 = vpop.permute.xlu1 %936 }
 0x59f   :  { %v938_v10 = vsel %vm48_vm1, %v935_v17, %v937_v62  ;;  %v939_v13 = vsel %vm48_vm1, %v937_v62, %v935_v17 }
 0x5a0   :  { %v3420_v63 = vadd.f32 %v930_v57, %v918_v31  ;;  %v3422_v2 = vadd.f32 %v931_v61, %v918_v31  ;;  %v941_v4 = vpop.permute.xlu0 %940 }
 0x5a2   :  { %v943_v7 = vpop.permute.xlu1 %942  ;;  %1002 = vrot.lane.b32.xlu1 %v3422_v2, %s2995_s27  ;;  %1000 = vrot.lane.b32.xlu0 %v3420_v63, %s2995_s27 }
 0x5a3   :  { %v944_v8 = vsel %vm55_vm0, %v941_v4, %v943_v7  ;;  %v945_v9 = vsel %vm55_vm0, %v943_v7, %v941_v4 }
 0x5a4   :  { %v946_v14 = vsel %vm3078_vm3, %v938_v10, %v945_v9  ;;  %v947_v15 = vsel %vm3074_vm2, %v939_v13, %v944_v8 }
 0x5a5   :  { %v949_v18 = vadd.f32 %v947_v15, %v3388_v35  ;;  %v948_v19 = vadd.f32 %v946_v14, %v3385_v33 }
 0x5a6   :  { %1008 = vrot.lane.b32.xlu1 %v3422_v2, %s2994_s26  ;;  %1006 = vrot.lane.b32.xlu0 %v3420_v63, %s2994_s26 }
 0x5aa   :  { %952 = vrot.lane.b32.xlu1 %v949_v18, %s2996_s0  ;;  %950 = vrot.lane.b32.xlu0 %v948_v19, %s2996_s0 }
 0x5ae   :  { %958 = vrot.lane.b32.xlu1 %v949_v18, %s2997_s30  ;;  %956 = vrot.lane.b32.xlu0 %v948_v19, %s2997_s30 }
 0x614   :  { %v1003_v20 = vpop.permute.xlu1 %1002  ;;  %v1001_v0 = vpop.permute.xlu0 %1000 }
 0x615   :  { %v1004_v1 = vsel %vm48_vm1, %v1001_v0, %v1003_v20  ;;  %v1005_v23 = vsel %vm48_vm1, %v1003_v20, %v1001_v0 }
 0x618   :  { %v1009_v21 = vpop.permute.xlu1 %1008  ;;  %v1007_v22 = vpop.permute.xlu0 %1006 }
 0x619   :  { %v1010_v24 = vsel %vm55_vm0, %v1007_v22, %v1009_v21  ;;  %v1011_v25 = vsel %vm55_vm0, %v1009_v21, %v1007_v22 }
 0x61a   :  { %v1012_v26 = vsel %vm3078_vm3, %v1004_v1, %v1011_v25  ;;  %v1013_v29 = vsel %vm3074_vm2, %v1005_v23, %v1010_v24 }
 0x61b   :  { %v1014_v30 = vadd.f32 %v1012_v26, %v3420_v63  ;;  %v1015_v31 = vadd.f32 %v1013_v29, %v3422_v2 }
 0x61c   :  { %v953_v32 = vpop.permute.xlu1 %952  ;;  %v951_v34 = vpop.permute.xlu0 %950 }
 0x61d   :  { %1016 = vrot.lane.b32.xlu0 %v1014_v30, %s2996_s0  ;;  %1018 = vrot.lane.b32.xlu1 %v1015_v31, %s2996_s0  ;;  %v954_v36 = vsel %vm74_vm4, %v951_v34, %v953_v32  ;;  %v955_v39 = vsel %vm74_vm4, %v953_v32, %v951_v34 }
 0x620   :  { %v959_v37 = vpop.permute.xlu1 %958  ;;  %v957_v38 = vpop.permute.xlu0 %956 }
 0x621   :  { %v960_v40 = vsel %vm4095_vm5, %v957_v38, %v959_v37  ;;  %v961_v42 = vsel %vm4095_vm5, %v959_v37, %v957_v38  ;;  %1022 = vrot.lane.b32.xlu0 %v1014_v30, %s2997_s30  ;;  %1024 = vrot.lane.b32.xlu1 %v1015_v31, %s2997_s30 }
 0x622   :  { %v962_v46 = vsel %vm3104_vm6, %v954_v36, %v961_v42  ;;  %v963_v48 = vsel %vm3108_vm7, %v955_v39, %v960_v40 }
 0x623   :  { %v964_v50 = vadd.f32 %v962_v46, %v948_v19  ;;  %v965_v53 = vadd.f32 %v963_v48, %v949_v18 }
 0x625   :  { %966 = vrot.lane.b32.xlu0 %v964_v50, %s2998_s8  ;;  %968 = vrot.lane.b32.xlu1 %v965_v53, %s2998_s8 }
 0x629   :  { %972 = vrot.lane.b32.xlu0 %v964_v50, %s2999_s9  ;;  %974 = vrot.lane.b32.xlu1 %v965_v53, %s2999_s9 }
 0x68f   :  { %v1019_v54 = vpop.permute.xlu1 %1018  ;;  %v1017_v16 = vpop.permute.xlu0 %1016 }
 0x690   :  { %v1020_v17 = vsel %vm74_vm4, %v1017_v16, %v1019_v54  ;;  %v1021_v57 = vsel %vm74_vm4, %v1019_v54, %v1017_v16 }
 0x693   :  { %v1025_v55 = vpop.permute.xlu1 %1024  ;;  %v1023_v56 = vpop.permute.xlu0 %1022 }
 0x694   :  { %v1026_v61 = vsel %vm4095_vm5, %v1023_v56, %v1025_v55  ;;  %v1027_v62 = vsel %vm4095_vm5, %v1025_v55, %v1023_v56 }
 0x695   :  { %v1028_v4 = vsel %vm3104_vm6, %v1020_v17, %v1027_v62  ;;  %v1029_v7 = vsel %vm3108_vm7, %v1021_v57, %v1026_v61 }
 0x696   :  { %v1030_v8 = vadd.f32 %v1028_v4, %v1014_v30  ;;  %v1031_v9 = vadd.f32 %v1029_v7, %v1015_v31 }
 0x697   :  { %v969_v10 = vpop.permute.xlu1 %968  ;;  %v967_v13 = vpop.permute.xlu0 %966 }
 0x698   :  { %1032 = vrot.lane.b32.xlu0 %v1030_v8, %s2998_s8  ;;  %1034 = vrot.lane.b32.xlu1 %v1031_v9, %s2998_s8  ;;  %v970_v14 = vsel %vm4094_vm8, %v967_v13, %v969_v10  ;;  %v971_v19 = vsel %vm4094_vm8, %v969_v10, %v967_v13 }
 0x69b   :  { %v975_v15 = vpop.permute.xlu1 %974  ;;  %v973_v18 = vpop.permute.xlu0 %972 }
 0x69c   :  { %v976_v20 = vsel %vm4112_vm9, %v973_v18, %v975_v15  ;;  %v977_v0 = vsel %vm4113_vm12, %v975_v15, %v973_v18  ;;  %1038 = vrot.lane.b32.xlu0 %v1030_v8, %s2999_s9  ;;  %1040 = vrot.lane.b32.xlu1 %v1031_v9, %s2999_s9  ;;  %vm4114_vm12 = vmmov %vm4112_vm9 }
 0x69d   :  { %v978_v21 = vsel %vm3132_vm10, %v970_v14, %v977_v0  ;;  %v979_v22 = vsel %vm3136_vm11, %v971_v19, %v976_v20 }
 0x69e   :  { %v980_v1 = vadd.f32 %v978_v21, %v964_v50  ;;  %v981_v23 = vadd.f32 %v979_v22, %v965_v53 }
 0x6a0   :  { %982 = vrot.lane.b32.xlu0 %v980_v1, %s3000_s10  ;;  %984 = vrot.lane.b32.xlu1 %v981_v23, %s3000_s10 }
 0x6a4   :  { %988 = vrot.lane.b32.xlu0 %v980_v1, %s3001_s11  ;;  %990 = vrot.lane.b32.xlu1 %v981_v23, %s3001_s11 }
 0x70a   :  { %v1035_v24 = vpop.permute.xlu1 %1034  ;;  %v1033_v25 = vpop.permute.xlu0 %1032 }
 0x70b   :  { %v1036_v30 = vsel %vm4094_vm8, %v1033_v25, %v1035_v24  ;;  %v1037_v31 = vsel %vm4094_vm8, %v1035_v24, %v1033_v25 }
 0x70e   :  { %v1041_v26 = vpop.permute.xlu1 %1040  ;;  %v1039_v29 = vpop.permute.xlu0 %1038 }
 0x70f   :  { %v1042_v32 = vsel %vm4112_vm9, %v1039_v29, %v1041_v26  ;;  %v1043_v34 = vsel %vm4114_vm12, %v1041_v26, %v1039_v29  ;;  %vm4115_vm9 = vcmp.lt.s32.totalorder %v3062_v3, 120 }
 0x710   :  { %v1044_v36 = vsel %vm3132_vm10, %v1036_v30, %v1043_v34  ;;  %v1045_v37 = vsel %vm3136_vm11, %v1037_v31, %v1042_v32  ;;  %vm4116_vm12 = vmmov %vm4115_vm9 }
 0x711   :  { %v1046_v38 = vadd.f32 %v1044_v36, %v1030_v8  ;;  %v1047_v39 = vadd.f32 %v1045_v37, %v1031_v9  ;;  %vm4117_vm8 = vmmov %vm4115_vm9 }
 0x712   :  { %v985_v40 = vpop.permute.xlu1 %984  ;;  %v983_v42 = vpop.permute.xlu0 %982  ;;  %vm4118_vm5 = vmmov %vm4117_vm8 }
 0x713   :  { %1048 = vrot.lane.b32.xlu0 %v1046_v38, %s3000_s10  ;;  %1050 = vrot.lane.b32.xlu1 %v1047_v39, %s3000_s10  ;;  %v986_v55 = vsel %vm4115_vm9, %v983_v42, %v985_v40  ;;  %v987_v56 = vsel %vm4116_vm12, %v985_v40, %v983_v42 }
 0x716   :  { %v991_v46 = vpop.permute.xlu1 %990  ;;  %v989_v48 = vpop.permute.xlu0 %988 }
 0x717   :  { %1054 = vrot.lane.b32.xlu0 %v1046_v38, %s3001_s11  ;;  %1056 = vrot.lane.b32.xlu1 %v1047_v39, %s3001_s11  ;;  %v992_v54 = vsel %vm133_vm13, %v989_v48, %v991_v46  ;;  %v993_v16 = vsel %vm133_vm13, %v991_v46, %v989_v48 }
 0x718   :  { %v994_v17 = vsel %vm3160_vm14, %v986_v55, %v993_v16  ;;  %v995_v57 = vsel %vm3164_vm15, %v987_v56, %v992_v54 }
 0x719   :  { %v996_v14 = vadd.f32 %v994_v17, %v980_v1  ;;  %v997_v15 = vadd.f32 %v995_v57, %v981_v23 }
 0x785   :  { %v1051_v50 = vpop.permute.xlu1 %1050  ;;  %v1049_v53 = vpop.permute.xlu0 %1048 }
 0x786   :  { %v1052_v4 = vsel %vm4117_vm8, %v1049_v53, %v1051_v50  ;;  %v1053_v7 = vsel %vm4118_vm5, %v1051_v50, %v1049_v53 }
 0x789   :  { %v1057_v61 = vpop.permute.xlu1 %1056  ;;  %v1055_v62 = vpop.permute.xlu0 %1054 }
 0x78a   :  { %v1058_v8 = vsel %vm133_vm13, %v1055_v62, %v1057_v61  ;;  %v1059_v9 = vsel %vm133_vm13, %v1057_v61, %v1055_v62 }
 0x78b   :  { %v1060_v10 = vsel %vm3160_vm14, %v1052_v4, %v1059_v9  ;;  %v1061_v13 = vsel %vm3164_vm15, %v1053_v7, %v1058_v8 }
 0x78c   :  { %v1062_v18 = vadd.f32 %v1060_v10, %v1046_v38  ;;  %v1063_v19 = vadd.f32 %v1061_v13, %v1047_v39 }
 0x78e   :  { %v1064_v20 = vadd.f32 %v1062_v18, %v996_v14  ;;  %v1065_v0 = vadd.f32 %v1063_v19, %v997_v15 }
 0x790   :  { %v1066_v21 = vmul.f32 0.03125, %v1064_v20  ;;  %v1067_v22 = vmul.f32 0.03125, %v1065_v0 }
 0x792   :  { %v3557_v24 = vsub.f32 %v3385_v33, %v1066_v21  ;;  %v3560_v25 = vsub.f32 %v3388_v35, %v1067_v22  ;;  %v3569_v1 = vsub.f32 %v3420_v63, %v1066_v21  ;;  %v3572_v23 = vsub.f32 %v3422_v2, %v1067_v22 }
 0x794   :  { %v1072_v26 = vmul.f32 %v3557_v24, %v3557_v24  ;;  %v1073_v29 = vmul.f32 %v3560_v25, %v3560_v25  ;;  %v1140_v33 = vmul.f32 %v3569_v1, %v3569_v1  ;;  %v1141_v35 = vmul.f32 %v3572_v23, %v3572_v23 }
 0x796   :  { %1074 = vrot.lane.b32.xlu0 %v1072_v26, %s2995_s27  ;;  %1076 = vrot.lane.b32.xlu1 %v1073_v29, %s2995_s27 }
 0x79a   :  { %1080 = vrot.lane.b32.xlu0 %v1072_v26, %s2994_s26  ;;  %1082 = vrot.lane.b32.xlu1 %v1073_v29, %s2994_s26 }
 0x79e   :  { %1142 = vrot.lane.b32.xlu0 %v1140_v33, %s2995_s27  ;;  %1144 = vrot.lane.b32.xlu1 %v1141_v35, %s2995_s27 }
 0x7a2   :  { %1148 = vrot.lane.b32.xlu0 %v1140_v33, %s2994_s26  ;;  %1150 = vrot.lane.b32.xlu1 %v1141_v35, %s2994_s26 }
 0x808   :  { %v1075_v63 = vpop.permute.xlu0 %1074  ;;  %v1077_v2 = vpop.permute.xlu1 %1076 }
 0x809   :  { %v1078_v32 = vsel %vm48_vm1, %v1075_v63, %v1077_v2  ;;  %v1079_v34 = vsel %vm48_vm1, %v1077_v2, %v1075_v63 }
 0x80c   :  { %v1081_v30 = vpop.permute.xlu0 %1080  ;;  %v1083_v31 = vpop.permute.xlu1 %1082 }
 0x80d   :  { %v1084_v36 = vsel %vm55_vm0, %v1081_v30, %v1083_v31  ;;  %v1085_v37 = vsel %vm55_vm0, %v1083_v31, %v1081_v30 }
 0x80e   :  { %v1086_v38 = vsel %vm3078_vm3, %v1078_v32, %v1085_v37  ;;  %v1087_v39 = vsel %vm3074_vm2, %v1079_v34, %v1084_v36 }
 0x80f   :  { %v1088_v40 = vadd.f32 %v1086_v38, %v1072_v26  ;;  %v1089_v42 = vadd.f32 %v1087_v39, %v1073_v29 }
 0x810   :  { %v1143_v46 = vpop.permute.xlu0 %1142  ;;  %v1145_v48 = vpop.permute.xlu1 %1144 }
 0x811   :  { %1090 = vrot.lane.b32.xlu0 %v1088_v40, %s2996_s0  ;;  %1092 = vrot.lane.b32.xlu1 %v1089_v42, %s2996_s0  ;;  %v1146_v50 = vsel %vm48_vm1, %v1143_v46, %v1145_v48  ;;  %v1147_v16 = vsel %vm48_vm1, %v1145_v48, %v1143_v46 }
 0x814   :  { %v1149_v53 = vpop.permute.xlu0 %1148  ;;  %v1151_v54 = vpop.permute.xlu1 %1150 }
 0x815   :  { %v1152_v55 = vsel %vm55_vm0, %v1149_v53, %v1151_v54  ;;  %v1153_v56 = vsel %vm55_vm0, %v1151_v54, %v1149_v53  ;;  %1096 = vrot.lane.b32.xlu0 %v1088_v40, %s2997_s30  ;;  %1098 = vrot.lane.b32.xlu1 %v1089_v42, %s2997_s30 }
 0x816   :  { %v1154_v17 = vsel %vm3078_vm3, %v1146_v50, %v1153_v56  ;;  %v1155_v57 = vsel %vm3074_vm2, %v1147_v16, %v1152_v55  ;;  %vm4119_vm2 = vcmp.lt.s32.totalorder %v3062_v3, 2 }
 0x817   :  { %v1156_v61 = vadd.f32 %v1154_v17, %v1140_v33  ;;  %v1157_v62 = vadd.f32 %v1155_v57, %v1141_v35  ;;  %vm4120_vm3 = vmmov %vm4119_vm2 }
 0x818   :  { %vm4121_vm5 = vmmov %vm4119_vm2 }
 0x819   :  { %1158 = vrot.lane.b32.xlu0 %v1156_v61, %s2996_s0  ;;  %1160 = vrot.lane.b32.xlu1 %v1157_v62, %s2996_s0  ;;  %vm4122_vm8 = vmmov %vm4119_vm2 }
 0x81d   :  { %1164 = vrot.lane.b32.xlu0 %v1156_v61, %s2997_s30  ;;  %1166 = vrot.lane.b32.xlu1 %v1157_v62, %s2997_s30 }
 0x883   :  { %v1091_v4 = vpop.permute.xlu0 %1090  ;;  %v1093_v7 = vpop.permute.xlu1 %1092 }
 0x884   :  { %v1094_v12 = vsel %vm74_vm4, %v1091_v4, %v1093_v7  ;;  %v1095_v11 = vsel %vm74_vm4, %v1093_v7, %v1091_v4 }
 0x887   :  { %v1097_v8 = vpop.permute.xlu0 %1096  ;;  %v1099_v9 = vpop.permute.xlu1 %1098 }
 0x888   :  { %v1100_v10 = vsel %vm4119_vm2, %v1097_v8, %v1099_v9  ;;  %v1101_v13 = vsel %vm4120_vm3, %v1099_v9, %v1097_v8  ;;  %v2666_v8 = vld [vmem:[%s4086_s4] sm:$0xff] }
 0x889   :  { %v1102_v14 = vsel %vm3104_vm6, %v1094_v12, %v1101_v13  ;;  %v1103_v15 = vsel %vm3108_vm7, %v1095_v11, %v1100_v10 }
 0x88a   :  { %v1104_v18 = vadd.f32 %v1102_v14, %v1088_v40  ;;  %v1105_v19 = vadd.f32 %v1103_v15, %v1089_v42 }
 0x88b   :  { %v1159_v20 = vpop.permute.xlu0 %1158  ;;  %v1161_v0 = vpop.permute.xlu1 %1160 }
 0x88c   :  { %1106 = vrot.lane.b32.xlu0 %v1104_v18, %s2998_s8  ;;  %1108 = vrot.lane.b32.xlu1 %v1105_v19, %s2998_s8  ;;  %v1162_v21 = vsel %vm74_vm4, %v1159_v20, %v1161_v0  ;;  %v1163_v29 = vsel %vm74_vm4, %v1161_v0, %v1159_v20  ;;  %vm4123_vm4 = vcmp.lt.s32.totalorder %v3062_v3, 124 }
 0x88d   :  { %vm4127_vm12 = vmmov %vm4123_vm4 }
 0x88e   :  { %vm4128_vm2 = vmmov %vm4123_vm4 }
 0x88f   :  { %v1165_v22 = vpop.permute.xlu0 %1164  ;;  %v1167_v26 = vpop.permute.xlu1 %1166 }
 0x890   :  { %v1168_v33 = vsel %vm4121_vm5, %v1165_v22, %v1167_v26  ;;  %v1169_v35 = vsel %vm4122_vm8, %v1167_v26, %v1165_v22  ;;  %1112 = vrot.lane.b32.xlu0 %v1104_v18, %s2999_s9  ;;  %1114 = vrot.lane.b32.xlu1 %v1105_v19, %s2999_s9 }
 0x891   :  { %v1170_v63 = vsel %vm3104_vm6, %v1162_v21, %v1169_v35  ;;  %v1171_v2 = vsel %vm3108_vm7, %v1163_v29, %v1168_v33  ;;  %vm4124_vm6 = vmmov %vm4123_vm4  ;;  %vm4125_vm7 = vcmp.lt.s32.totalorder %v3062_v3, 4 }
 0x892   :  { %v1172_v30 = vadd.f32 %v1170_v63, %v1156_v61  ;;  %v1173_v31 = vadd.f32 %v1171_v2, %v1157_v62  ;;  %vm4126_vm9 = vmmov %vm4125_vm7 }
 0x893   :  { %vm4129_vm3 = vmmov %vm4125_vm7 }
 0x894   :  { %1174 = vrot.lane.b32.xlu0 %v1172_v30, %s2998_s8  ;;  %1176 = vrot.lane.b32.xlu1 %v1173_v31, %s2998_s8  ;;  %vm4130_vm5 = vmmov %vm4129_vm3 }
 0x898   :  { %1180 = vrot.lane.b32.xlu0 %v1172_v30, %s2999_s9  ;;  %1182 = vrot.lane.b32.xlu1 %v1173_v31, %s2999_s9 }
 0x8fe   :  { %v1107_v32 = vpop.permute.xlu0 %1106  ;;  %v1109_v34 = vpop.permute.xlu1 %1108 }
 0x8ff   :  { %v1110_v27 = vsel %vm4123_vm4, %v1107_v32, %v1109_v34  ;;  %v1111_v28 = vsel %vm4124_vm6, %v1109_v34, %v1107_v32 }
 0x902   :  { %v1113_v36 = vpop.permute.xlu0 %1112  ;;  %v1115_v37 = vpop.permute.xlu1 %1114 }
 0x903   :  { %v1116_v38 = vsel %vm4125_vm7, %v1113_v36, %v1115_v37  ;;  %v1117_v39 = vsel %vm4126_vm9, %v1115_v37, %v1113_v36  ;;  %v1222_v37 = vld [vmem:[%s4087_s3] sm:$0xff] }
 0x904   :  { %v1118_v40 = vsel %vm3132_vm10, %v1110_v27, %v1117_v39  ;;  %v1119_v42 = vsel %vm3136_vm11, %v1111_v28, %v1116_v38 }
 0x905   :  { %v1120_v46 = vadd.f32 %v1118_v40, %v1104_v18  ;;  %v1121_v48 = vadd.f32 %v1119_v42, %v1105_v19 }
 0x906   :  { %v1175_v50 = vpop.permute.xlu0 %1174  ;;  %v1177_v53 = vpop.permute.xlu1 %1176 }
 0x907   :  { %1122 = vrot.lane.b32.xlu0 %v1120_v46, %s3000_s10  ;;  %1124 = vrot.lane.b32.xlu1 %v1121_v48, %s3000_s10  ;;  %v1178_v54 = vsel %vm4127_vm12, %v1175_v50, %v1177_v53  ;;  %v1179_v56 = vsel %vm4128_vm2, %v1177_v53, %v1175_v50  ;;  %vm38_vm12 = vcmp.ne.s32.totalorder %v3068_v6, 0  ;;  %vm39_vm2 = vcmp.ne.s32.totalorder %v3065_v5, 0 }
 0x90a   :  { %v1181_v16 = vpop.permute.xlu0 %1180  ;;  %v1183_v55 = vpop.permute.xlu1 %1182 }
 0x90b   :  { %v1184_v17 = vsel %vm4129_vm3, %v1181_v16, %v1183_v55  ;;  %v1185_v57 = vsel %vm4130_vm5, %v1183_v55, %v1181_v16  ;;  %1128 = vrot.lane.b32.xlu0 %v1120_v46, %s3001_s11  ;;  %1130 = vrot.lane.b32.xlu1 %v1121_v48, %s3001_s11 }
 0x90c   :  { %v1186_v61 = vsel %vm3132_vm10, %v1178_v54, %v1185_v57  ;;  %v1187_v62 = vsel %vm3136_vm11, %v1179_v56, %v1184_v17  ;;  %vm4131_vm10 = vcmp.lt.s32.totalorder %v3062_v3, 120  ;;  %v1225_v54 = vld [vmem:[%s4087_s3 + $0x18] sm:$0xff] }
 0x90d   :  { %v1188_v4 = vadd.f32 %v1186_v61, %v1172_v30  ;;  %v1189_v7 = vadd.f32 %v1187_v62, %v1173_v31  ;;  %vm4132_vm11 = vmmov %vm4131_vm10  ;;  %v1226_v62 = vld [vmem:[%s4087_s3 + $0x20] sm:$0xff] }
 0x90e   :  { %vm4133_vm8 = vmmov %vm4131_vm10 }
 0x90f   :  { %1190 = vrot.lane.b32.xlu0 %v1188_v4, %s3000_s10  ;;  %1192 = vrot.lane.b32.xlu1 %v1189_v7, %s3000_s10  ;;  %vm4134_vm4 = vmmov %vm4133_vm8 }
 0x913   :  { %1196 = vrot.lane.b32.xlu0 %v1188_v4, %s3001_s11  ;;  %1198 = vrot.lane.b32.xlu1 %v1189_v7, %s3001_s11 }
 0x917   :  { %2720 = vperm.xlu0 %2984, %v2666_v8  }
 0x979   :  { %v1123_v43 = vpop.permute.xlu0 %1122  ;;  %v1125_v9 = vpop.permute.xlu1 %1124 }
 0x97a   :  { %v1126_v15 = vsel %vm4131_vm10, %v1123_v43, %v1125_v9  ;;  %v1127_v18 = vsel %vm4132_vm11, %v1125_v9, %v1123_v43 }
 0x97d   :  { %v1129_v12 = vpop.permute.xlu0 %1128  ;;  %v1131_v44 = vpop.permute.xlu1 %1130 }
 0x97e   :  { %v1132_v13 = vsel %vm133_vm13, %v1129_v12, %v1131_v44  ;;  %v1133_v14 = vsel %vm133_vm13, %v1131_v44, %v1129_v12 }
 0x97f   :  { %v1134_v19 = vsel %vm3160_vm14, %v1126_v15, %v1133_v14  ;;  %v1135_v20 = vsel %vm3164_vm15, %v1127_v18, %v1132_v13  ;;  %v1227_v18 = vld [vmem:[%s4087_s3 + $0x28] sm:$0xff] }
 0x980   :  { %v1136_v2 = vadd.f32 %v1134_v19, %v1120_v46  ;;  %v1137_v30 = vadd.f32 %v1135_v20, %v1121_v48  ;;  %v1224_v46 = vld [vmem:[%s4087_s3 + $0x10] sm:$0xff] }
 0x981   :  { %v1191_v11 = vpop.permute.xlu0 %1190  ;;  %v1193_v10 = vpop.permute.xlu1 %1192 }
 0x982   :  { %v1194_v22 = vsel %vm4133_vm8, %v1191_v11, %v1193_v10  ;;  %v1195_v26 = vsel %vm4134_vm4, %v1193_v10, %v1191_v11 }
 0x985   :  { %v1197_v0 = vpop.permute.xlu0 %1196  ;;  %v1199_v21 = vpop.permute.xlu1 %1198 }
 0x986   :  { %v1200_v29 = vsel %vm133_vm13, %v1197_v0, %v1199_v21  ;;  %v1201_v33 = vsel %vm133_vm13, %v1199_v21, %v1197_v0  ;;  %vm4135_vm13 = vcmask 64512  }
 0x987   :  { %v1202_v35 = vsel %vm3160_vm14, %v1194_v22, %v1201_v33  ;;  %v1203_v63 = vsel %vm3164_vm15, %v1195_v26, %v1200_v29  ;;  %v1229_v38 = vsel %vm4135_vm13, %v1222_v37, 0  ;;  %vm4136_vm14 = vmmov %vm4135_vm13 }
 0x988   :  { %v1204_v31 = vadd.f32 %v1202_v35, %v1188_v4  ;;  %v1205_v32 = vadd.f32 %v1203_v63, %v1189_v7  ;;  %v1232_v40 = vsel %vm4136_vm14, %v1223_v59, 0  ;;  %v3715_v42 = vand.u32 4294901760, %v1229_v38  ;;  %vm4137_vm15 = vmmov %vm4135_vm13 }
 0x989   :  { %v3720_v48 = vand.u32 4294901760, %v1232_v40  ;;  %v1235_v53 = vsel %vm4137_vm15, %v1224_v46, 0  ;;  %vm4138_vm6 = vmmov %vm4135_vm13 }
 0x98a   :  { %v1206_v34 = vadd.f32 %v1204_v31, %v1136_v2  ;;  %v1207_v36 = vadd.f32 %v1205_v32, %v1137_v30  ;;  %v3723_v50 = vsub.f32 %v1229_v38, %v3715_v42  ;;  %v3732_v55 = vand.u32 4294901760, %v1235_v53  ;;  %vm4139_vm7 = vmmov %vm4138_vm6 }
 0x98b   :  { %v3730_v16 = vsub.f32 %v1232_v40, %v3720_v48  ;;  %v1238_v17 = vsel %vm4138_vm6, %v1225_v54, 0  ;;  %v1241_v14 = vsel %vm4139_vm7, %v1226_v62, 0  ;;  %vm4140_vm9 = vmmov %vm4138_vm6 }
 0x98c   :  { %v1208_v27 = vmul.f32 0.03125, %v1206_v34  ;;  %v1209_v28 = vmul.f32 0.03125, %v1207_v36  ;;  %v3735_v56 = vand.u32 4294901760, %v3723_v50  ;;  %v3747_v43 = vsub.f32 %v1235_v53, %v3732_v55 }
 0x98d   :  { %v3739_v61 = vand.u32 4294901760, %v3730_v16  ;;  %v3749_v9 = vand.u32 4294901760, %v1238_v17  ;;  %v3777_v26 = vand.u32 4294901760, %v1241_v14  ;;  %v1244_v35 = vsel %vm4140_vm9, %v1227_v18, 0 }
 0x98e   :  { %v1210_v60 = vadd.f32 1e-05, %v1208_v27  ;;  %v1211_v39 = vadd.f32 1e-05, %v1209_v28  ;;  %v1316_v44 = vsub.f32 %v3723_v50, %v3735_v56  ;;  %v3766_v20 = vand.u32 4294901760, %v3747_v43 }
 0x98f   :  { %v3804_v28 = vsub.f32 %v1241_v14, %v3777_v26  ;;  %v3806_v59 = vand.u32 4294901760, %v1244_v35 }
 0x990   :  { %2990 = vrsqrt.f32 %v1210_v60  ;;  %v3773_v21 = vand.u32 4294901760, %v1316_v44  ;;  %v1338_v32 = vsub.f32 %v3747_v43, %v3766_v20 }
 0x991   :  { %2992 = vrsqrt.f32 %v1211_v39  ;;  %v3834_v62 = vsub.f32 %v1244_v35, %v3806_v59 }
 0x992   :  { %v3825_v53 = vand.u32 4294901760, %v1338_v32 }
 0x99a   :  { %v2991_v57 = vpop.eup %2990 }
 0x99b   :  { %v2993_v4 = vpop.eup %2992  ;;  %v1214_v7 = vmul.f32 %v2991_v57, %v3557_v24  ;;  %v1216_v8 = vmul.f32 %v2991_v57, %v3569_v1  ;;  %v1327_v1 = vsub.f32 %v3730_v16, %v3739_v61  ;;  %v3831_v57 = vand.u32 4294901760, %v3804_v28 }
 0x99c   :  { %v1215_v12 = vmul.f32 %v2993_v4, %v3560_v25  ;;  %v1217_v11 = vmul.f32 %v2993_v4, %v3572_v23  ;;  %v3769_v23 = vsub.f32 %v1238_v17, %v3749_v9 }
 0x99d   :  { %v1218_v10 = vmax.f32 %v1214_v7, 0.0  ;;  %v1220_v13 = vmax.f32 %v1216_v8, 0.0  ;;  %v3788_v2 = vand.u32 4294901760, %v1327_v1  ;;  %v1360_v7 = vsub.f32 %v3804_v28, %v3831_v57 }
 0x99e   :  { %v1219_v15 = vmax.f32 %v1215_v12, 0.0  ;;  %v1221_v24 = vmax.f32 %v1217_v11, 0.0  ;;  %v3798_v34 = vand.u32 4294901760, %v3769_v23  ;;  %v3846_v8 = vand.u32 4294901760, %v3834_v62 }
 0x99f   :  { %v3761_v19 = vand.u32 4294901760, %v1218_v10  ;;  %v3763_v25 = vand.u32 4294901760, %v1220_v13  ;;  %v3852_v12 = vand.u32 4294901760, %v1360_v7 }
 0x9a0   :  { %v3771_v0 = vand.u32 4294901760, %v1219_v15  ;;  %v3775_v22 = vand.u32 4294901760, %v1221_v24  ;;  %v1349_v17 = vsub.f32 %v3769_v23, %v3798_v34  ;;  %v1371_v44 = vsub.f32 %v3834_v62, %v3846_v8 }
 0x9a1   :  { %v3780_v29 = vsub.f32 %v1218_v10, %v3761_v19  ;;  %v3783_v33 = vsub.f32 %v1220_v13, %v3763_v25 }
 0x9a2   :  { %1247 = vmatprep.subr.mxu1 %v3771_v0  ;;  %v2090_v63 = vsub.f32 %v1221_v24, %v3775_v22  ;;  %v3791_v30 = vsub.f32 %v1219_v15, %v3771_v0  ;;  %v3841_v4 = vand.u32 4294901760, %v1349_v17  ;;  %v3860_v11 = vand.u32 4294901760, %v1371_v44  ;;  %v2721_v17 = vpop.permute.xlu0 %2720 }
 0x9a3   :  { %1249 = vmatpush1.msra.mxu1 %v3761_v19  ;;  %v1387_v31 = vand.u32 4294901760, %v3780_v29  ;;  %v2097_v36 = vand.u32 4294901760, %v3783_v33 }
 0x9a4   :  { %1318 = vmatmul.mubr.f32.vlgmr.msra.gmra.mrb[6].mxu1 %v3773_v21  ;;  %2208 = vmatprep.subr.mxu0 %v2090_v63  ;;  %v2091_v37 = vand.u32 4294901760, %v2090_v63  ;;  %v1381_v27 = vand.u32 4294901760, %v3791_v30 }
 0x9a5   :  { %2211 = vmatpush1.msra.mxu0 %v3783_v33  ;;  %1323 = vmatprep.mubr.f32.mxu1 %v3002_v58  ;;  %v1388_v38 = vsub.f32 %v3780_v29, %v1387_v31  ;;  %v3814_v60 = vsub.f32 %v3783_v33, %v2097_v36 }
 0x9a6   :  { %2277 = vmatmul.mubr.f32.vlgmr.msra.gmra.mrb[10].mxu0 %v3723_v50  ;;  %2324 = vmatprep.subr.mxu0 %v3775_v22  ;;  %v1382_v39 = vsub.f32 %v3791_v30, %v1381_v27  ;;  %v3821_v40 = vsub.f32 %v2090_v63, %v2091_v37 }
 0x9a7   :  { %2326 = vmatpush1.msra.mxu0 %v3763_v25  ;;  %2282 = vmatprep.mubr.f32.mxu0 %v3002_v58  ;;  %v1389_v46 = vand.u32 4294901760, %v1388_v38 }
 0x9a8   :  { %1329 = vmatmul.mubr.f32.gmra.mrb[8].mxu1 %v3788_v2  ;;  %2447 = vmatprep.subr.mxu0 %v2091_v37  ;;  %v1383_v54 = vand.u32 4294901760, %v1382_v39 }
 0x9a9   :  { %1334 = vmatprep.mubr.f32.mxu1 %v3002_v58 }
 0x9aa   :  { %1384 = vmatprep.subr.mxu1 %v1383_v54  ;;  %2285 = vmatmul.mubr.f32.gmra.mrb[12].mxu0 %v3730_v16  ;;  %v2669_v54 = vld [vmem:[%s4088_s5 + $0x8] sm:$0xff] }
 0x9ab   :  { %1390 = vmatpush1.msra.mxu1 %v1389_v46  ;;  %2290 = vmatprep.mubr.f32.mxu0 %v3002_v58 }
 0x9ac   :  { %1340 = vmatmul.mubr.f32.gmra.mrb[10].mxu1 %v3825_v53  ;;  %1498 = vmatprep.subr.mxu1 %v3791_v30 }
 0x9ad   :  { %1345 = vmatprep.mubr.f32.mxu1 %v3002_v58 }
 0x9ae   :  { %2293 = vmatmul.mubr.f32.gmra.mrb[14].mxu0 %v3747_v43 }
 0x9af   :  { %2298 = vmatprep.mubr.f32.mxu0 %v3002_v58 }
 0x9b0   :  { %1351 = vmatmul.mubr.f32.gmra.mrb[12].mxu1 %v3841_v4 }
 0x9b1   :  { %1356 = vmatprep.mubr.f32.mxu1 %v3002_v58 }
 0x9b2   :  { %2301 = vmatmul.mubr.f32.gmra.mrb[16].mxu0 %v3769_v23 }
 0x9b3   :  { %2306 = vmatprep.mubr.f32.mxu0 %v3002_v58 }
 0x9b4   :  { %1362 = vmatmul.mubr.f32.gmra.mrb[14].mxu1 %v3852_v12 }
 0x9b5   :  { %1367 = vmatprep.mubr.f32.mxu1 %v3002_v58 }
 0x9b6   :  { %2309 = vmatmul.mubr.f32.gmra.mrb[18].mxu0 %v3804_v28 }
 0x9b7   :  { %2314 = vmatprep.mubr.f32.mxu0 %v3002_v58 }
 0x9b8   :  { %1373 = vmatmul.mubr.f32.gmra.mrb[16].mxu1 %v3860_v11 }
 0x9b9   :  { %1453 = vmatprep.mubr.f32.mxu1 %v3002_v58 }
 0x9ba   :  { %2317 = vmatmul.mubr.f32.gmra.mrb[20].mxu0 %v3834_v62 }
 0x9bb   :  { %2389 = vmatprep.mubr.f32.mxu0 %v3002_v58 }
 0x9bc   :  { %1455 = vmatmul.mubr.f32.vlgmr.msra.gmra.mrb[6].mxu1 %v3715_v42 }
 0x9bd   :  { %1501 = vmatpush1.msra.mxu1 %v3780_v29  ;;  %1460 = vmatprep.mubr.f32.mxu1 %v3002_v58 }
 0x9be   :  { %1614 = vmatprep.subr.mxu1 %v3771_v0  ;;  %2393 = vmatmul.mubr.f32.vlgmr.msra.gmra.mrb[10].mxu0 %v3735_v56 }
 0x9bf   :  { %2451 = vmatpush1.msra.mxu0 %v2097_v36  ;;  %2398 = vmatprep.mubr.f32.mxu0 %v3002_v58 }
 0x9c0   :  { %2558 = vmatprep.subr.mxu0 %v3775_v22  ;;  %1462 = vmatmul.mubr.f32.gmra.mrb[8].mxu1 %v3720_v48 }
 0x9c1   :  { %1467 = vmatprep.mubr.f32.mxu1 %v3002_v58 }
 0x9c2   :  { %2402 = vmatmul.mubr.f32.gmra.mrb[12].mxu0 %v3739_v61 }
 0x9c3   :  { %2407 = vmatprep.mubr.f32.mxu0 %v3002_v58 }
 0x9c4   :  { %1469 = vmatmul.mubr.f32.gmra.mrb[10].mxu1 %v3732_v55 }
 0x9c5   :  { %1474 = vmatprep.mubr.f32.mxu1 %v3002_v58 }
 0x9c6   :  { %2411 = vmatmul.mubr.f32.gmra.mrb[14].mxu0 %v3766_v20 }
 0x9c7   :  { %2416 = vmatprep.mubr.f32.mxu0 %v3002_v58 }
 0x9c8   :  { %1476 = vmatmul.mubr.f32.gmra.mrb[12].mxu1 %v3749_v9 }
 0x9c9   :  { %1481 = vmatprep.mubr.f32.mxu1 %v3002_v58 }
 0x9ca   :  { %2420 = vmatmul.mubr.f32.gmra.mrb[16].mxu0 %v3798_v34 }
 0x9cb   :  { %2425 = vmatprep.mubr.f32.mxu0 %v3002_v58 }
 0x9cc   :  { %1483 = vmatmul.mubr.f32.gmra.mrb[14].mxu1 %v3777_v26 }
 0x9cd   :  { %1488 = vmatprep.mubr.f32.mxu1 %v3002_v58 }
 0x9ce   :  { %2429 = vmatmul.mubr.f32.gmra.mrb[18].mxu0 %v3831_v57 }
 0x9cf   :  { %2434 = vmatprep.mubr.f32.mxu0 %v3002_v58 }
 0x9d0   :  { %1490 = vmatmul.mubr.f32.gmra.mrb[16].mxu1 %v3806_v59 }
 0x9d1   :  { %1564 = vmatprep.mubr.f32.mxu1 %v3002_v58 }
 0x9d2   :  { %2438 = vmatmul.mubr.f32.gmra.mrb[20].mxu0 %v3846_v8 }
 0x9d3   :  { %2514 = vmatprep.mubr.f32.mxu0 %v3002_v58 }
 0x9d4   :  { %1567 = vmatmul.mubr.f32.vlgmr.msra.gmra.mrb[6].mxu1 %v3723_v50  ;;  %v2093_v50 = vand.u32 4294901760, %v3821_v40 }
 0x9d5   :  { %1616 = vmatpush1.msra.mxu1 %v3761_v19  ;;  %1572 = vmatprep.mubr.f32.mxu1 %v3002_v58 }
 0x9d6   :  { %1737 = vmatprep.subr.mxu1 %v1381_v27  ;;  %2516 = vmatmul.mubr.f32.vlgmr.msra.gmra.mrb[10].mxu0 %v3715_v42 }
 0x9d7   :  { %2560 = vmatpush1.msra.mxu0 %v3763_v25  ;;  %2521 = vmatprep.mubr.f32.mxu0 %v3002_v58 }
 0x9d8   :  { %1575 = vmatmul.mubr.f32.gmra.mrb[8].mxu1 %v3730_v16  ;;  %v2099_v16 = vand.u32 4294901760, %v3814_v60 }
 0x9d9   :  { %1580 = vmatprep.mubr.f32.mxu1 %v3002_v58 }
 0x9da   :  { %2523 = vmatmul.mubr.f32.gmra.mrb[12].mxu0 %v3720_v48 }
 0x9db   :  { %2528 = vmatprep.mubr.f32.mxu0 %v3002_v58 }
 0x9dc   :  { %1583 = vmatmul.mubr.f32.gmra.mrb[10].mxu1 %v3747_v43 }
 0x9dd   :  { %1588 = vmatprep.mubr.f32.mxu1 %v3002_v58 }
 0x9de   :  { %2530 = vmatmul.mubr.f32.gmra.mrb[14].mxu0 %v3732_v55 }
 0x9df   :  { %2535 = vmatprep.mubr.f32.mxu0 %v3002_v58 }
 0x9e0   :  { %1591 = vmatmul.mubr.f32.gmra.mrb[12].mxu1 %v3769_v23 }
 0x9e1   :  { %1596 = vmatprep.mubr.f32.mxu1 %v3002_v58 }
 0x9e2   :  { %2537 = vmatmul.mubr.f32.gmra.mrb[16].mxu0 %v3749_v9 }
 0x9e3   :  { %2542 = vmatprep.mubr.f32.mxu0 %v3002_v58 }
 0x9e4   :  { %1599 = vmatmul.mubr.f32.gmra.mrb[14].mxu1 %v3804_v28 }
 0x9e5   :  { %1604 = vmatprep.mubr.f32.mxu1 %v3002_v58 }
 0x9e6   :  { %2544 = vmatmul.mubr.f32.gmra.mrb[18].mxu0 %v3777_v26 }
 0x9e7   :  { %2549 = vmatprep.mubr.f32.mxu0 %v3002_v58 }
 0x9e8   :  { %1607 = vmatmul.mubr.f32.gmra.mrb[16].mxu1 %v3834_v62 }
 0x9e9   :  { %1679 = vmatprep.mubr.f32.mxu1 %v3002_v58 }
 0x9ea   :  { %2551 = vmatmul.mubr.f32.gmra.mrb[20].mxu0 %v3806_v59 }
 0x9eb   :  { %2623 = vmatprep.mubr.f32.mxu0 %v3002_v58 }
 0x9ec   :  { %1683 = vmatmul.mubr.f32.vlgmr.msra.gmra.mrb[6].mxu1 %v3735_v56  ;;  %v2667_v56 = vld [vmem:[%s4086_s4 + $0x8] sm:$0xff] }
 0x9ed   :  { %1741 = vmatpush1.msra.mxu1 %v1387_v31  ;;  %1688 = vmatprep.mubr.f32.mxu1 %v3002_v58 }
 0x9ee   :  { %1848 = vmatprep.subr.mxu1 %v3771_v0  ;;  %2625 = vmatmul.mubr.f32.vlgmr.msra.gmra.mrb[10].mxu0 %v3715_v42 }
 0x9ef   :  { %2630 = vmatprep.mubr.f32.mxu0 %v3002_v58  ;;  %2725 = vperm.xlu1 %2985, %v2667_v56   ;;  %v2776_v56 = vsel %vm38_vm12, 1.0, %v3002_v58 }
 0x9f0   :  { %1692 = vmatmul.mubr.f32.gmra.mrb[8].mxu1 %v3739_v61 }
 0x9f1   :  { %1697 = vmatprep.mubr.f32.mxu1 %v3002_v58 }
 0x9f2   :  { %2632 = vmatmul.mubr.f32.gmra.mrb[12].mxu0 %v3720_v48 }
 0x9f3   :  { %2637 = vmatprep.mubr.f32.mxu0 %v3002_v58 }
 0x9f4   :  { %1701 = vmatmul.mubr.f32.gmra.mrb[10].mxu1 %v3766_v20 }
 0x9f5   :  { %1706 = vmatprep.mubr.f32.mxu1 %v3002_v58 }
 0x9f6   :  { %2639 = vmatmul.mubr.f32.gmra.mrb[14].mxu0 %v3732_v55 }
 0x9f7   :  { %2644 = vmatprep.mubr.f32.mxu0 %v3002_v58 }
 0x9f8   :  { %1710 = vmatmul.mubr.f32.gmra.mrb[12].mxu1 %v3798_v34 }
 0x9f9   :  { %1715 = vmatprep.mubr.f32.mxu1 %v3002_v58 }
 0x9fa   :  { %2646 = vmatmul.mubr.f32.gmra.mrb[16].mxu0 %v3749_v9 }
 0x9fb   :  { %2651 = vmatprep.mubr.f32.mxu0 %v3002_v58 }
 0x9fc   :  { %1719 = vmatmul.mubr.f32.gmra.mrb[14].mxu1 %v3831_v57 }
 0x9fd   :  { %1724 = vmatprep.mubr.f32.mxu1 %v3002_v58 }
 0x9fe   :  { %2653 = vmatmul.mubr.f32.gmra.mrb[18].mxu0 %v3777_v26 }
 0x9ff   :  { %2658 = vmatprep.mubr.f32.mxu0 %v3002_v58 }
 0xa00   :  { %1728 = vmatmul.mubr.f32.gmra.mrb[16].mxu1 %v3846_v8 }
 0xa01   :  { %1804 = vmatprep.mubr.f32.mxu1 %v3002_v58 }
 0xa02   :  { %2660 = vmatmul.mubr.f32.gmra.mrb[20].mxu0 %v3806_v59 }
 0xa04   :  { %1806 = vmatmul.mubr.f32.vlgmr.msra.gmra.mrb[6].mxu1 %v3715_v42 }
 0xa05   :  { %1850 = vmatpush1.msra.mxu1 %v3761_v19  ;;  %1811 = vmatprep.mubr.f32.mxu1 %v3002_v58 }
 0xa06   :  { %1957 = vmatprep.subr.mxu1 %v3775_v22 }
 0xa08   :  { %1813 = vmatmul.mubr.f32.gmra.mrb[8].mxu1 %v3720_v48 }
 0xa09   :  { %1818 = vmatprep.mubr.f32.mxu1 %v3002_v58 }
 0xa0c   :  { %1820 = vmatmul.mubr.f32.gmra.mrb[10].mxu1 %v3732_v55 }
 0xa0d   :  { %1825 = vmatprep.mubr.f32.mxu1 %v3002_v58 }
 0xa10   :  { %1827 = vmatmul.mubr.f32.gmra.mrb[12].mxu1 %v3749_v9 }
 0xa11   :  { %1832 = vmatprep.mubr.f32.mxu1 %v3002_v58 }
 0xa14   :  { %1834 = vmatmul.mubr.f32.gmra.mrb[14].mxu1 %v3777_v26 }
 0xa15   :  { %1839 = vmatprep.mubr.f32.mxu1 %v3002_v58 }
 0xa18   :  { %1841 = vmatmul.mubr.f32.gmra.mrb[16].mxu1 %v3806_v59 }
 0xa19   :  { %1913 = vmatprep.mubr.f32.mxu1 %v3002_v58 }
 0xa1c   :  { %1915 = vmatmul.mubr.f32.vlgmr.msra.gmra.mrb[6].mxu1 %v3715_v42 }
 0xa1d   :  { %1959 = vmatpush1.msra.mxu1 %v3763_v25  ;;  %1920 = vmatprep.mubr.f32.mxu1 %v3002_v58 }
 0xa1e   :  { %2094 = vmatprep.subr.mxu1 %v2093_v50 }
 0xa20   :  { %1922 = vmatmul.mubr.f32.gmra.mrb[8].mxu1 %v3720_v48 }
 0xa21   :  { %1927 = vmatprep.mubr.f32.mxu1 %v3002_v58 }
 0xa24   :  { %1929 = vmatmul.mubr.f32.gmra.mrb[10].mxu1 %v3732_v55 }
 0xa25   :  { %1934 = vmatprep.mubr.f32.mxu1 %v3002_v58 }
 0xa28   :  { %1936 = vmatmul.mubr.f32.gmra.mrb[12].mxu1 %v3749_v9 }
 0xa29   :  { %1941 = vmatprep.mubr.f32.mxu1 %v3002_v58 }
 0xa2c   :  { %1943 = vmatmul.mubr.f32.gmra.mrb[14].mxu1 %v3777_v26 }
 0xa2d   :  { %1948 = vmatprep.mubr.f32.mxu1 %v3002_v58 }
 0xa30   :  { %1950 = vmatmul.mubr.f32.gmra.mrb[16].mxu1 %v3806_v59 }
 0xa31   :  { %2022 = vmatprep.mubr.f32.mxu1 %v3002_v58 }
 0xa34   :  { %2028 = vmatmul.mubr.f32.vlgmr.msra.gmra.mrb[10].mxu1 %v3773_v21 }
 0xa35   :  { %2100 = vmatpush1.msra.mxu1 %v2099_v16  ;;  %2033 = vmatprep.mubr.f32.mxu1 %v3002_v58 }
 0xa38   :  { %2039 = vmatmul.mubr.f32.gmra.mrb[12].mxu1 %v3788_v2 }
 0xa39   :  { %2044 = vmatprep.mubr.f32.mxu1 %v3002_v58 }
 0xa3c   :  { %2050 = vmatmul.mubr.f32.gmra.mrb[14].mxu1 %v3825_v53  ;;  %v2668_v53 = vld [vmem:[%s4088_s5] sm:$0xff] }
 0xa3d   :  { %2055 = vmatprep.mubr.f32.mxu1 %v3002_v58 }
 0xa40   :  { %2061 = vmatmul.mubr.f32.gmra.mrb[16].mxu1 %v3841_v4 }
 0xa41   :  { %2066 = vmatprep.mubr.f32.mxu1 %v3002_v58 }
 0xa44   :  { %2072 = vmatmul.mubr.f32.gmra.mrb[18].mxu1 %v3852_v12 }
 0xa45   :  { %2077 = vmatprep.mubr.f32.mxu1 %v3002_v58 }
 0xa48   :  { %2083 = vmatmul.mubr.f32.gmra.mrb[20].mxu1 %v3860_v11 }
 0xa49   :  { %2163 = vmatprep.mubr.f32.mxu1 %v3002_v58 }
 0xa4c   :  { %2165 = vmatmul.mubr.f32.vlgmr.msra.gmra.mrb[10].mxu1 %v3715_v42 }
 0xa4d   :  { %2170 = vmatprep.mubr.f32.mxu1 %v3002_v58 }
 0xa50   :  { %2172 = vmatmul.mubr.f32.gmra.mrb[12].mxu1 %v3720_v48 }
 0xa51   :  { %2177 = vmatprep.mubr.f32.mxu1 %v3002_v58 }
 0xa54   :  { %2179 = vmatmul.mubr.f32.gmra.mrb[14].mxu1 %v3732_v55 }
 0xa55   :  { %2184 = vmatprep.mubr.f32.mxu1 %v3002_v58 }
 0xa58   :  { %2186 = vmatmul.mubr.f32.gmra.mrb[16].mxu1 %v3749_v9 }
 0xa59   :  { %2191 = vmatprep.mubr.f32.mxu1 %v3002_v58 }
 0xa5c   :  { %2193 = vmatmul.mubr.f32.gmra.mrb[18].mxu1 %v3777_v26 }
 0xa5d   :  { %2198 = vmatprep.mubr.f32.mxu1 %v3002_v58 }
 0xa60   :  { %2200 = vmatmul.mubr.f32.gmra.mrb[20].mxu1 %v3806_v59 }
 0xa6e   :  { %v2726_v57 = vpop.permute.xlu1 %2725 }
 0xac1   :  { %v2626_v42 = vpop.f32.mrb[10].mxu0 }
 0xac2   :  { %v2628_v61 = vpop.f32.mrb[11].mxu0 }
 0xac5   :  { %v2633_v43 = vpop.f32.mrb[12].mxu0 }
 0xac6   :  { %v2635_v48 = vpop.f32.mrb[13].mxu0 }
 0xac9   :  { %v2640_v10 = vpop.f32.mrb[14].mxu0 }
 0xaca   :  { %v2642_v13 = vpop.f32.mrb[15].mxu0 }
 0xacd   :  { %v2647_v14 = vpop.f32.mrb[16].mxu0 }
 0xace   :  { %v2649_v55 = vpop.f32.mrb[17].mxu0 }
 0xad1   :  { %v2654_v15 = vpop.f32.mrb[18].mxu0 }
 0xad2   :  { %v2656_v24 = vpop.f32.mrb[19].mxu0 }
 0xad5   :  { %v2661_v1 = vpop.f32.mrb[20].mxu0 }
 0xad6   :  { %v2663_v9 = vpop.f32.mrb[21].mxu0 }
 0xaef   :  { %v1916_v18 = vpop.f32.mrb[6].mxu1 }
 0xaf0   :  { %2694 = vrot.lane.b32.xlu0 %v1916_v18, %s2995_s27  ;;  %v1918_v19 = vpop.f32.mrb[7].mxu1 }
 0xaf3   :  { %v1923_v25 = vpop.f32.mrb[8].mxu1 }
 0xaf4   :  { %2698 = vrot.lane.b32.xlu0 %v1918_v19, %s2995_s27  ;;  %2696 = vrot.lane.b32.xlu1 %v1923_v25, %s2995_s27  ;;  %v1925_v20 = vpop.f32.mrb[9].mxu1 }
 0xaf8   :  { %2700 = vrot.lane.b32.xlu1 %v1925_v20, %s2995_s27 }
 0xb1f   :  { %v2166_v23 = vpop.f32.mrb[10].mxu1 }
 0xb20   :  { %v2783_v0 = vadd.f32 %v3396_v41, %v2166_v23  ;;  %v2168_v21 = vpop.f32.mrb[11].mxu1 }
 0xb21   :  { %v2788_v22 = vadd.f32 %v3400_v45, %v2168_v21 }
 0xb22   :  { %v4011_v26 = vadd.f32 %v2783_v0, %v2626_v42  ;;  %v2777_v42 = vsel %vm39_vm2, 1.0, %v3002_v58 }
 0xb23   :  { %v4013_v29 = vadd.f32 %v2788_v22, %v2628_v61  ;;  %v2173_v33 = vpop.f32.mrb[12].mxu1 }
 0xb24   :  { %v2793_v35 = vadd.f32 %v3402_v47, %v2173_v33  ;;  %v2175_v63 = vpop.f32.mrb[13].mxu1 }
 0xb25   :  { %v2798_v2 = vadd.f32 %v3404_v49, %v2175_v63 }
 0xb26   :  { %v4017_v30 = vadd.f32 %v2793_v35, %v2633_v43 }
 0xb27   :  { %v4019_v31 = vadd.f32 %v2798_v2, %v2635_v48  ;;  %v2180_v32 = vpop.f32.mrb[14].mxu1 }
 0xb28   :  { %v2802_v34 = vadd.f32 %v2640_v10, %v2180_v32  ;;  %v2182_v41 = vpop.f32.mrb[15].mxu1 }
 0xb29   :  { %v2804_v36 = vadd.f32 %v2642_v13, %v2182_v41 }
 0xb2b   :  { %v2187_v37 = vpop.f32.mrb[16].mxu1 }
 0xb2c   :  { %v2806_v45 = vadd.f32 %v2647_v14, %v2187_v37  ;;  %v2189_v27 = vpop.f32.mrb[17].mxu1 }
 0xb2d   :  { %v2808_v28 = vadd.f32 %v2649_v55, %v2189_v27 }
 0xb2f   :  { %v2194_v59 = vpop.f32.mrb[18].mxu1 }
 0xb30   :  { %v2810_v38 = vadd.f32 %v2654_v15, %v2194_v59  ;;  %v2196_v60 = vpop.f32.mrb[19].mxu1 }
 0xb31   :  { %v2811_v39 = vadd.f32 %v2656_v24, %v2196_v60 }
 0xb32   :  { %2674 = vrot.lane.b32.xlu0 %v2810_v38, %s2994_s26 }
 0xb33   :  { %v2201_v47 = vpop.f32.mrb[20].mxu1 }
 0xb34   :  { %v2812_v49 = vadd.f32 %v2661_v1, %v2201_v47  ;;  %v2203_v40 = vpop.f32.mrb[21].mxu1 }
 0xb35   :  { %v2813_v46 = vadd.f32 %v2663_v9, %v2203_v40 }
 0xb36   :  { %2678 = vrot.lane.b32.xlu0 %v2811_v39, %s2994_s26  ;;  %2676 = vrot.lane.b32.xlu1 %v2812_v49, %s2994_s26 }
 0xb3a   :  { %2738 = vperm.xlu0 %2984, %v2668_v53   ;;  %2680 = vrot.lane.b32.xlu1 %v2813_v46, %s2994_s26 }
 0xb3e   :  { %2743 = vperm.xlu1 %2985, %v2669_v54  }
 0xb62   :  { %v2695_v62 = vpop.permute.xlu0 %2694 }
 0xb66   :  { %v2697_v4 = vpop.permute.xlu1 %2696  ;;  %v2699_v7 = vpop.permute.xlu0 %2698 }
 0xb67   :  { %v2702_v50 = vsel %vm48_vm1, %v2695_v62, %v2699_v7  ;;  %v2704_v16 = vsel %vm48_vm1, %v2699_v7, %v2695_v62 }
 0xb68   :  { %v2706_v5 = vmul.f32 %v3409_v51, %v2702_v50  ;;  %v2707_v48 = vmul.f32 %v3412_v52, %v2704_v16 }
 0xb6a   :  { %v2701_v8 = vpop.permute.xlu1 %2700  ;;  %v2803_v24 = vadd.f32 %v2802_v34, %v2706_v5  ;;  %v2805_v1 = vadd.f32 %v2804_v36, %v2707_v48 }
 0xb6b   :  { %v2703_v10 = vsel %vm48_vm1, %v2697_v4, %v2701_v8  ;;  %v2705_v13 = vsel %vm48_vm1, %v2701_v8, %v2697_v4 }
 0xb6c   :  { %v2708_v9 = vmul.f32 %v3409_v51, %v2703_v10  ;;  %v2709_v18 = vmul.f32 %v3412_v52, %v2705_v13  ;;  %v2754_v22 = vadd.f32 %v2803_v24, %v2721_v17  ;;  %v2755_v33 = vadd.f32 %v2805_v1, %v2721_v17 }
 0xb6e   :  { %v2807_v0 = vadd.f32 %v2806_v45, %v2708_v9  ;;  %v2809_v21 = vadd.f32 %v2808_v28, %v2709_v18 }
 0xba4   :  { %v2675_v12 = vpop.permute.xlu0 %2674 }
 0xba8   :  { %v2677_v44 = vpop.permute.xlu1 %2676  ;;  %v2679_v11 = vpop.permute.xlu0 %2678 }
 0xba9   :  { %v2682_v61 = vsel %vm55_vm0, %v2675_v12, %v2679_v11  ;;  %v2684_v43 = vsel %vm55_vm0, %v2679_v11, %v2675_v12 }
 0xbaa   :  { %v2686_v14 = vmul.f32 %v2776_v56, %v2684_v43  ;;  %v2687_v55 = vmul.f32 %v2777_v42, %v2682_v61 }
 0xbac   :  { %v2681_v6 = vpop.permute.xlu1 %2680  ;;  %v2785_v19 = vadd.f32 %v4011_v26, %v2686_v14  ;;  %v2790_v25 = vadd.f32 %v4013_v29, %v2687_v55 }
 0xbad   :  { %v2683_v58 = vsel %vm55_vm0, %v2677_v44, %v2681_v6  ;;  %v2685_v15 = vsel %vm55_vm0, %v2681_v6, %v2677_v44 }
 0xbae   :  { %v2688_v20 = vmul.f32 %v2776_v56, %v2685_v15  ;;  %v2689_v23 = vmul.f32 %v2777_v42, %v2683_v58  ;;  %v2786_v63 = vadd.f32 %v2785_v19, %v2721_v17  ;;  %v2791_v2 = vadd.f32 %v2790_v25, %v2721_v17 }
 0xbb0   :  { %v2795_v35 = vadd.f32 %v4017_v30, %v2688_v20  ;;  %v2800_v3 = vadd.f32 %v4019_v31, %v2689_v23  ;;  %v2756_v30 = vadd.f32 %v2807_v0, %v2726_v57  ;;  %v2757_v31 = vadd.f32 %v2809_v21, %v2726_v57 }
 0xbb2   :  { %v2796_v26 = vadd.f32 %v2795_v35, %v2726_v57  ;;  %v2801_v29 = vadd.f32 %v2800_v3, %v2726_v57 }
 0xbb9   :  { %v2739_v32 = vpop.permute.xlu0 %2738 }
 0xbba   :  { %v2746_v51 = vadd.f32 %v2786_v63, %v2739_v32  ;;  %v2747_v34 = vadd.f32 %v2791_v2, %v2739_v32  ;;  %v2758_v52 = vadd.f32 %v2754_v22, %v2739_v32  ;;  %v2759_v41 = vadd.f32 %v2755_v33, %v2739_v32 }
 0xbbc   :  { %2750 = vst [vmem:[%s4089_s6] sm:$0xff] %v2746_v51  ;;  %2751 = vst [vmem:[%s4089_s6 + $0x8] sm:$0xff] %v2747_v34 }
 0xbbd   :  { %2762 = vst [vmem:[%s4090_s7] sm:$0xff] %v2758_v52  ;;  %2763 = vst [vmem:[%s4090_s7 + $0x8] sm:$0xff] %v2759_v41  ;;  %v2744_v36 = vpop.permute.xlu1 %2743 }
 0xbbe   :  { %v2748_v37 = vadd.f32 %v2796_v26, %v2744_v36  ;;  %v2749_v45 = vadd.f32 %v2801_v29, %v2744_v36  ;;  %v2760_v27 = vadd.f32 %v2756_v30, %v2744_v36  ;;  %v2761_v28 = vadd.f32 %v2757_v31, %v2744_v36 }
 0xbc0   :  { %2752 = vst [vmem:[%s4089_s6 + $0x10] sm:$0xff] %v2748_v37  ;;  %2753 = vst [vmem:[%s4089_s6 + $0x18] sm:$0xff] %v2749_v45 }
 0xbc1   :  { %2764 = vst [vmem:[%s4090_s7 + $0x10] sm:$0xff] %v2760_v27  ;;  %2765 = vst [vmem:[%s4090_s7 + $0x18] sm:$0xff] %v2761_v28 }

</bundles_post_ra>
